<compile_context>
chip_gen: v5e
topology: v5e:2x2
jax: 0.10.0
libtpu: 0.0.40
codegen_flags: <defaults>
</compile_context>

<pallas_src>
import math

import jax
import jax.numpy as jnp
from jax.experimental import pallas as pl
from jax.experimental.pallas import tpu as pltpu

# ---- model hyper-parameters (small, consistent with the module) ----
B, S, D = 2, 8, 32          # batch, sequence length, d_model
VOCAB = 50                  # vocab_size
NHEAD = 4                   # nn.TransformerEncoderLayer(nhead=4)
HEAD_DIM = D // NHEAD
FF = 2048                   # PyTorch default dim_feedforward
NUM_LAYERS = 4
LN_EPS = 1e-5               # PyTorch LayerNorm default eps

N = B * S                   # tokens per call
BH = NHEAD * S              # flattened (head, seq) rows per batch element
DEC_PAD = 128               # decoder output padded to a full lane width
NEG = -1e9                  # finite "minus infinity" (NaN-safe)


def _use_bf16_ff_tail() -> bool:
    # bf16 elementwise FF tail only where the VPU has native bf16 (v6e / v7x).
    try:
        kind = jax.devices()[0].device_kind.lower()
    except Exception:
        return True
    return not any(v in kind for v in ("v2", "v3", "v4", "v5"))


# -------------------- in-kernel helpers --------------------
def _layernorm(x, w, b):
    mu = jnp.mean(x, axis=-1, keepdims=True)
    var = jnp.mean(jnp.square(x - mu), axis=-1, keepdims=True)
    return (x - mu) * jax.lax.rsqrt(var + LN_EPS) * w + b


# -------------------- the fused Pallas kernel (one grid step per layer) -----
def _make_kernel(bf16_ff_tail: bool):
    def kernel(tok_ref, pe_ref, emb_ref, dec_w_ref, dec_b_ref,
               in_w_ref, out_w_ref, ff1_w_ref, ff2_w_ref, ff1_b_ref, vec_ref,
               o_ref, x_ref):
        l = pl.program_id(0)

        # ---- step 0 only: embedding (one-hot matmul, gather-free) + PE ----
        @pl.when(l == 0)
        def _embed():
            tok = tok_ref[...]                                      # (N,1) i32
            viota = jax.lax.broadcasted_iota(jnp.int32, (N, VOCAB), 1)
            onehot = jnp.where(viota == tok, 1.0, 0.0)              # (N,VOCAB)
            x_ref[...] = (jnp.dot(onehot, emb_ref[...],
                                  preferred_element_type=jnp.float32)
                          + pe_ref[...])
            # No sqrt(d_model) scaling: the reference forward does not scale.

        x = x_ref[...]                                              # (N, D) f32

        # ---- coalesced small per-layer params: (3, 3D) slab ----
        vec = vec_ref[0]                                            # (3, 3D)
        in_b = vec[0:1, :]                                          # (1, 3D)
        out_b = vec[1:2, 0:D]
        ln1_w = vec[1:2, D:2 * D]
        ln1_b = vec[1:2, 2 * D:3 * D]
        ff2_b = vec[2:3, 0:D]
        ln2_w = vec[2:3, D:2 * D]
        ln2_b = vec[2:3, 2 * D:3 * D]
        ff1_b = ff1_b_ref[0]                                        # (1, FF)

        # ---- multi-head self attention: all heads in ONE einsum pair ----
        qkv = jnp.dot(x.astype(jnp.bfloat16), in_w_ref[0],
                      preferred_element_type=jnp.float32) + in_b    # (N, 3D)
        scale = 1.0 / math.sqrt(HEAD_DIM)
        q3 = (qkv[:, 0:D] * scale).reshape(B, S, D)                 # scale in q
        k3 = qkv[:, D:2 * D].reshape(B, S, D)
        v3 = qkv[:, 2 * D:3 * D].reshape(B, S, D)

        def flat_heads(t):  # (B,S,D) -> (B, NHEAD*S, HEAD_DIM); row = h*S + s
            return jnp.concatenate(
                [t[:, :, h * HEAD_DIM:(h + 1) * HEAD_DIM] for h in range(NHEAD)],
                axis=1)

        q2, k2, v2 = flat_heads(q3), flat_heads(k3), flat_heads(v3)  # (B,BH,Hd)

        # combined (same-head & causal) additive mask over flattened rows.
        r = jax.lax.broadcasted_iota(jnp.int32, (BH, BH), 0)
        c = jax.lax.broadcasted_iota(jnp.int32, (BH, BH), 1)
        same_head = (r & (-S)) == (c & (-S))        # S is a power of two
        causal = (c & (S - 1)) <= (r & (S - 1))
        mask = jnp.where(same_head & causal, 0.0, NEG).astype(jnp.float32)

        s_att = jnp.einsum('bqd,bkd->bqk', q2, k2,
                           preferred_element_type=jnp.float32) + mask[None]
        s_att = s_att - jnp.max(s_att, axis=-1, keepdims=True)
        p = jnp.exp(s_att)
        p = p * pl.reciprocal(jnp.sum(p, axis=-1, keepdims=True), approx=True)
        ctx = jnp.einsum('bqk,bkd->bqd', p, v2,
                         preferred_element_type=jnp.float32)        # (B,BH,Hd)

        attn = jnp.concatenate(
            [ctx[:, h * S:(h + 1) * S, :] for h in range(NHEAD)],
            axis=-1).reshape(N, D)                                  # (N, D)
        attn = jnp.dot(attn.astype(jnp.bfloat16), out_w_ref[0],
                       preferred_element_type=jnp.float32) + out_b

        # ---- residual + post-norm 1 (f32) ----
        x = _layernorm(x + attn, ln1_w, ln1_b)

        # ---- feed forward (relu); bf16 MXU operands, f32 accumulation ----
        h1 = jnp.dot(x.astype(jnp.bfloat16), ff1_w_ref[0],
                     preferred_element_type=jnp.float32)            # (N, FF)
        if bf16_ff_tail:
            # bf16 elementwise tail (v6e/v7x): halves vreg pressure on the
            # (N, 2048) activation and feeds FF2 directly in bf16.
            h1 = jnp.maximum(h1.astype(jnp.bfloat16)
                             + ff1_b.astype(jnp.bfloat16), 0.0)
            h2 = jnp.dot(h1, ff2_w_ref[0],
                         preferred_element_type=jnp.float32) + ff2_b
        else:
            # f32 tail for chips without a bf16 VPU (v5e and older).
            h1 = jnp.maximum(h1 + ff1_b, 0.0)
            h2 = jnp.dot(h1.astype(jnp.bfloat16), ff2_w_ref[0],
                         preferred_element_type=jnp.float32) + ff2_b

        # ---- residual + post-norm 2; carry to the next grid step ----
        x = _layernorm(x + h2, ln2_w, ln2_b)
        x_ref[...] = x

        # ---- last step only: decoder (lane-dense 128 wide) + log_softmax ---
        @pl.when(l == NUM_LAYERS - 1)
        def _decode():
            logits = jnp.dot(x, dec_w_ref[...],
                             preferred_element_type=jnp.float32) + dec_b_ref[...]
            # padded columns carry a -1e9 bias -> exp() underflows to 0, so
            # the log-sum-exp over 128 lanes equals the one over the real 50.
            z = logits - jnp.max(logits, axis=-1, keepdims=True)
            lse = jnp.log(jnp.sum(jnp.exp(z), axis=-1, keepdims=True))
            o_ref[...] = z - lse

    return kernel


# -------------------- wrapper --------------------
def transformer_forward(tokens, params, *, bf16_ff_tail=None):
    if bf16_ff_tail is None:
        bf16_ff_tail = _use_bf16_ff_tail()
    tok2d = tokens.reshape(N, 1).astype(jnp.int32)

    grid_spec = pltpu.PrefetchScalarGridSpec(
        num_scalar_prefetch=0,
        grid=(NUM_LAYERS,),
        in_specs=[
            pl.BlockSpec((N, 1),         lambda l: (0, 0)),    # tokens
            pl.BlockSpec((N, D),         lambda l: (0, 0)),    # pos. encoding
            pl.BlockSpec((VOCAB, D),     lambda l: (0, 0)),    # embedding
            pl.BlockSpec((D, DEC_PAD),   lambda l: (0, 0)),    # decoder W (padded)
            pl.BlockSpec((1, DEC_PAD),   lambda l: (0, 0)),    # decoder b (padded)
            pl.BlockSpec((1, D, 3 * D),  lambda l: (l, 0, 0)),  # in_proj W
            pl.BlockSpec((1, D, D),      lambda l: (l, 0, 0)),  # out_proj W
            pl.BlockSpec((1, D, FF),     lambda l: (l, 0, 0)),  # ff1 W
            pl.BlockSpec((1, FF, D),     lambda l: (l, 0, 0)),  # ff2 W
            pl.BlockSpec((1, 1, FF),     lambda l: (l, 0, 0)),  # ff1 b
            pl.BlockSpec((1, 3, 3 * D),  lambda l: (l, 0, 0)),  # coalesced small params
        ],
        out_specs=pl.BlockSpec((N, DEC_PAD), lambda l: (0, 0)),
        scratch_shapes=[pltpu.VMEM((N, D), jnp.float32)],       # residual stream
    )

    out = pl.pallas_call(
        _make_kernel(bf16_ff_tail),
        out_shape=jax.ShapeDtypeStruct((N, DEC_PAD), jnp.float32),
        grid_spec=grid_spec,
        compiler_params=pltpu.CompilerParams(
            dimension_semantics=("arbitrary",)),
    )(tok2d, params['pe'], params['emb'], params['dec_w'], params['dec_b'],
      params['in_w'], params['out_w'], params['ff1_w'], params['ff2_w'],
      params['ff1_b'], params['vec_p'])
    return out[:, :VOCAB].reshape(B, S, VOCAB)


# -------------------- parameters --------------------
def positional_encoding(seq_len):
    position = jnp.arange(seq_len, dtype=jnp.float32)[:, None]
    div_term = jnp.exp(jnp.arange(0, D, 2, dtype=jnp.float32)
                       * (-math.log(10000.0) / D))
    pe = jnp.zeros((seq_len, D), jnp.float32)
    pe = pe.at[:, 0::2].set(jnp.sin(position * div_term))
    pe = pe.at[:, 1::2].set(jnp.cos(position * div_term))
    return pe


def init_params(key):
    keys = jax.random.split(key, 3 + NUM_LAYERS)
    emb = jax.random.normal(keys[0], (VOCAB, D), jnp.float32) * 0.02

    # decoder padded to 128 lanes; padded columns: zero weights, -1e9 bias.
    dec_w = jnp.zeros((D, DEC_PAD), jnp.float32)
    dec_w = dec_w.at[:, :VOCAB].set(
        jax.random.normal(keys[1], (D, VOCAB), jnp.float32) * 0.02)
    dec_b = jnp.full((1, DEC_PAD), NEG, jnp.float32)
    dec_b = dec_b.at[:, :VOCAB].set(
        jax.random.normal(keys[2], (1, VOCAB), jnp.float32) * 0.02)

    in_w, out_w, ff1_w, ff2_w = [], [], [], []
    in_b, out_b, ff1_b, ff2_b = [], [], [], []
    for i in range(NUM_LAYERS):
        ks = jax.random.split(keys[3 + i], 8)
        in_w.append(jax.random.normal(ks[0], (D, 3 * D), jnp.float32) * 0.02)
        out_w.append(jax.random.normal(ks[1], (D, D), jnp.float32) * 0.02)
        ff1_w.append(jax.random.normal(ks[2], (D, FF), jnp.float32) * 0.02)
        ff2_w.append(jax.random.normal(ks[3], (FF, D), jnp.float32) * 0.02)
        in_b.append(jax.random.normal(ks[4], (3 * D,), jnp.float32) * 0.02)
        out_b.append(jax.random.normal(ks[5], (D,), jnp.float32) * 0.02)
        ff1_b.append(jax.random.normal(ks[6], (FF,), jnp.float32) * 0.02)
        ff2_b.append(jax.random.normal(ks[7], (D,), jnp.float32) * 0.02)

    ones_d = jnp.ones((NUM_LAYERS, D), jnp.float32)    # LayerNorm weight init
    zeros_d = jnp.zeros((NUM_LAYERS, D), jnp.float32)  # LayerNorm bias init
    # coalesced small per-layer params (L, 3, 3D):
    #   row0 = in_proj bias, row1 = [out_b | ln1_w | ln1_b],
    #   row2 = [ff2_b | ln2_w | ln2_b]
    row1 = jnp.concatenate([jnp.stack(out_b), ones_d, zeros_d], axis=-1)
    row2 = jnp.concatenate([jnp.stack(ff2_b), ones_d, zeros_d], axis=-1)
    vec_p = jnp.stack([jnp.stack(in_b), row1, row2], axis=1)

    return dict(
        emb=emb,
        pe=jnp.tile(positional_encoding(S), (B, 1)),            # (N, D)
        dec_w=dec_w, dec_b=dec_b,
        # matmul weights stored (L, in, out) in bf16 (f32 accumulation in-kernel)
        in_w=jnp.stack(in_w).astype(jnp.bfloat16),              # (L, D, 3D)
        out_w=jnp.stack(out_w).astype(jnp.bfloat16),            # (L, D, D)
        ff1_w=jnp.stack(ff1_w).astype(jnp.bfloat16),            # (L, D, FF)
        ff2_w=jnp.stack(ff2_w).astype(jnp.bfloat16),            # (L, FF, D)
        ff1_b=jnp.stack(ff1_b)[:, None, :],                     # (L, 1, FF) f32
        vec_p=vec_p,                                            # (L, 3, 3D) f32
    )


if __name__ == "__main__":
    key = jax.random.PRNGKey(0)
    pkey, dkey = jax.random.split(key)
    params = init_params(pkey)
    tokens = jax.random.randint(dkey, (B, S), 0, VOCAB, dtype=jnp.int32)

    out = jax.block_until_ready(transformer_forward(tokens, params))

    assert out.shape == (B, S, VOCAB) and out.dtype == jnp.float32
    assert bool(jnp.all(jnp.isfinite(out)))
    # log-probabilities should (roughly) sum to 1 after exp
    assert bool(jnp.all(jnp.abs(jnp.sum(jnp.exp(out), axis=-1) - 1.0) < 1e-3))
    print("KERNEL_OK")
</pallas_src>

<mosaic_0001>
module attributes {stable_mosaic.version = 11 : i64} {
  func.func @kernel(%arg0: i32, %arg1: memref<16x1xi32, #tpu.memory_space<vmem>>, %arg2: memref<16x32xf32, #tpu.memory_space<vmem>>, %arg3: memref<50x32xf32, #tpu.memory_space<vmem>>, %arg4: memref<32x128xf32, #tpu.memory_space<vmem>>, %arg5: memref<1x128xf32, #tpu.memory_space<vmem>>, %arg6: memref<1x32x96xbf16, #tpu.memory_space<vmem>>, %arg7: memref<1x32x32xbf16, #tpu.memory_space<vmem>>, %arg8: memref<1x32x2048xbf16, #tpu.memory_space<vmem>>, %arg9: memref<1x2048x32xbf16, #tpu.memory_space<vmem>>, %arg10: memref<1x1x2048xf32, #tpu.memory_space<vmem>>, %arg11: memref<1x3x96xf32, #tpu.memory_space<vmem>>, %arg12: memref<16x128xf32, #tpu.memory_space<vmem>>, %arg13: memref<16x32xf32, #tpu.memory_space<vmem>>) attributes {dimension_semantics = [#tpu.dimension_semantics<arbitrary>], iteration_bounds = array<i64: 4>, scalar_prefetch = 0 : i64, scratch_operands = 1 : i64, tpu.core_type = #tpu.core_type<tc>, window_params = [{pipeline_mode = #tpu.pipeline_mode<synchronous>, transform_indices = @transform_0, window_bounds = array<i64: 16, 1>}, {pipeline_mode = #tpu.pipeline_mode<synchronous>, transform_indices = @transform_1, window_bounds = array<i64: 16, 32>}, {pipeline_mode = #tpu.pipeline_mode<synchronous>, transform_indices = @transform_2, window_bounds = array<i64: 50, 32>}, {pipeline_mode = #tpu.pipeline_mode<synchronous>, transform_indices = @transform_3, window_bounds = array<i64: 32, 128>}, {pipeline_mode = #tpu.pipeline_mode<synchronous>, transform_indices = @transform_4, window_bounds = array<i64: 1, 128>}, {transform_indices = @transform_5, window_bounds = array<i64: 1, 32, 96>}, {transform_indices = @transform_6, window_bounds = array<i64: 1, 32, 32>}, {transform_indices = @transform_7, window_bounds = array<i64: 1, 32, 2048>}, {transform_indices = @transform_8, window_bounds = array<i64: 1, 2048, 32>}, {transform_indices = @transform_9, window_bounds = array<i64: 1, 1, 2048>}, {transform_indices = @transform_10, window_bounds = array<i64: 1, 3, 96>}, {pipeline_mode = #tpu.pipeline_mode<synchronous>, transform_indices = @transform_11, window_bounds = array<i64: 16, 128>}]} {
    %c0_i32 = arith.constant 0 : i32
    %0 = arith.cmpi eq, %arg0, %c0_i32 : i32
    %1 = arith.extui %0 : i1 to i32
    %c0_i32_0 = arith.constant 0 : i32
    %2 = arith.cmpi ne, %1, %c0_i32_0 : i32
    scf.if %2 {
      %c0_46 = arith.constant 0 : index
      %c0_47 = arith.constant 0 : index
      %152 = vector.load %arg1[%c0_46, %c0_47] : memref<16x1xi32, #tpu.memory_space<vmem>>, vector<16x1xi32>
      %153 = tpu.iota {dimensions = array<i32: 1>} : vector<16x50xi32>
      %154 = vector.broadcast %152 : vector<16x1xi32> to vector<16x50xi32>
      %155 = arith.cmpi eq, %153, %154 : vector<16x50xi32>
      %cst_48 = arith.constant 1.000000e+00 : f32
      %cst_49 = arith.constant 0.000000e+00 : f32
      %156 = vector.broadcast %cst_48 : f32 to vector<16x50xf32>
      %157 = vector.broadcast %cst_49 : f32 to vector<16x50xf32>
      %158 = arith.select %155, %156, %157 : vector<16x50xi1>, vector<16x50xf32>
      %c0_50 = arith.constant 0 : index
      %c0_51 = arith.constant 0 : index
      %159 = vector.load %arg3[%c0_50, %c0_51] : memref<50x32xf32, #tpu.memory_space<vmem>>, vector<50x32xf32>
      %cst_52 = arith.constant dense<0.000000e+00> : vector<16x32xf32>
      %160 = tpu.matmul %158, %159, %cst_52 {dimension_numbers = #tpu.dot_dimension_numbers<[1], [0], [0], [1], [0, 0, 1, 1], [], []>} : vector<16x50xf32>, vector<50x32xf32>, vector<16x32xf32> -> vector<16x32xf32>
      %c0_53 = arith.constant 0 : index
      %c0_54 = arith.constant 0 : index
      %161 = vector.load %arg2[%c0_53, %c0_54] : memref<16x32xf32, #tpu.memory_space<vmem>>, vector<16x32xf32>
      %162 = arith.addf %160, %161 : vector<16x32xf32>
      %c0_55 = arith.constant 0 : index
      %c0_56 = arith.constant 0 : index
      %163 = vector.load %arg13[%c0_55, %c0_56] : memref<16x32xf32, #tpu.memory_space<vmem>>, vector<16x32xf32>
      tpu.vector_store %arg13[%c0_55, %c0_56], %162 {strides = array<i32>} : memref<16x32xf32, #tpu.memory_space<vmem>>, vector<16x32xf32>,
    } else {
    }
    %c0 = arith.constant 0 : index
    %c0_1 = arith.constant 0 : index
    %3 = vector.load %arg13[%c0, %c0_1] : memref<16x32xf32, #tpu.memory_space<vmem>>, vector<16x32xf32>
    %c0_2 = arith.constant 0 : index
    %c0_3 = arith.constant 0 : index
    %c0_4 = arith.constant 0 : index
    %4 = vector.load %arg11[%c0_2, %c0_3, %c0_4] : memref<1x3x96xf32, #tpu.memory_space<vmem>>, vector<1x3x96xf32>
    %5 = vector.shape_cast %4 : vector<1x3x96xf32> to vector<3x96xf32>
    %6 = vector.extract_strided_slice %5 {offsets = [0, 0], sizes = [1, 96], strides = [1, 1]} : vector<3x96xf32> to vector<1x96xf32>
    %7 = vector.extract_strided_slice %5 {offsets = [1, 0], sizes = [1, 32], strides = [1, 1]} : vector<3x96xf32> to vector<1x32xf32>
    %8 = vector.extract_strided_slice %5 {offsets = [1, 32], sizes = [1, 32], strides = [1, 1]} : vector<3x96xf32> to vector<1x32xf32>
    %9 = vector.extract_strided_slice %5 {offsets = [1, 64], sizes = [1, 32], strides = [1, 1]} : vector<3x96xf32> to vector<1x32xf32>
    %10 = vector.extract_strided_slice %5 {offsets = [2, 0], sizes = [1, 32], strides = [1, 1]} : vector<3x96xf32> to vector<1x32xf32>
    %11 = vector.extract_strided_slice %5 {offsets = [2, 32], sizes = [1, 32], strides = [1, 1]} : vector<3x96xf32> to vector<1x32xf32>
    %12 = vector.extract_strided_slice %5 {offsets = [2, 64], sizes = [1, 32], strides = [1, 1]} : vector<3x96xf32> to vector<1x32xf32>
    %c0_5 = arith.constant 0 : index
    %c0_6 = arith.constant 0 : index
    %c0_7 = arith.constant 0 : index
    %13 = vector.load %arg10[%c0_5, %c0_6, %c0_7] : memref<1x1x2048xf32, #tpu.memory_space<vmem>>, vector<1x1x2048xf32>
    %14 = vector.shape_cast %13 : vector<1x1x2048xf32> to vector<1x2048xf32>
    %15 = arith.truncf %3 : vector<16x32xf32> to vector<16x32xbf16>
    %c0_8 = arith.constant 0 : index
    %c0_9 = arith.constant 0 : index
    %c0_10 = arith.constant 0 : index
    %16 = vector.load %arg6[%c0_8, %c0_9, %c0_10] : memref<1x32x96xbf16, #tpu.memory_space<vmem>>, vector<1x32x96xbf16>
    %17 = vector.shape_cast %16 : vector<1x32x96xbf16> to vector<32x96xbf16>
    %cst = arith.constant dense<0.000000e+00> : vector<16x96xf32>
    %18 = tpu.matmul %15, %17, %cst {dimension_numbers = #tpu.dot_dimension_numbers<[1], [0], [0], [1], [0, 0, 1, 1], [], []>} : vector<16x32xbf16>, vector<32x96xbf16>, vector<16x96xf32> -> vector<16x96xf32>
    %19 = vector.broadcast %6 : vector<1x96xf32> to vector<16x96xf32>
    %20 = arith.addf %18, %19 : vector<16x96xf32>
    %21 = vector.extract_strided_slice %20 {offsets = [0, 0], sizes = [16, 32], strides = [1, 1]} : vector<16x96xf32> to vector<16x32xf32>
    %cst_11 = arith.constant 0.353553385 : f32
    %22 = vector.broadcast %cst_11 : f32 to vector<16x32xf32>
    %23 = arith.mulf %21, %22 : vector<16x32xf32>
    %24 = vector.shape_cast %23 : vector<16x32xf32> to vector<2x8x32xf32>
    %25 = vector.extract_strided_slice %20 {offsets = [0, 32], sizes = [16, 32], strides = [1, 1]} : vector<16x96xf32> to vector<16x32xf32>
    %26 = vector.shape_cast %25 : vector<16x32xf32> to vector<2x8x32xf32>
    %27 = vector.extract_strided_slice %20 {offsets = [0, 64], sizes = [16, 32], strides = [1, 1]} : vector<16x96xf32> to vector<16x32xf32>
    %28 = vector.shape_cast %27 : vector<16x32xf32> to vector<2x8x32xf32>
    %29 = vector.extract_strided_slice %24 {offsets = [0, 0, 0], sizes = [2, 8, 8], strides = [1, 1, 1]} : vector<2x8x32xf32> to vector<2x8x8xf32>
    %30 = vector.extract_strided_slice %24 {offsets = [0, 0, 8], sizes = [2, 8, 8], strides = [1, 1, 1]} : vector<2x8x32xf32> to vector<2x8x8xf32>
    %31 = vector.extract_strided_slice %24 {offsets = [0, 0, 16], sizes = [2, 8, 8], strides = [1, 1, 1]} : vector<2x8x32xf32> to vector<2x8x8xf32>
    %32 = vector.extract_strided_slice %24 {offsets = [0, 0, 24], sizes = [2, 8, 8], strides = [1, 1, 1]} : vector<2x8x32xf32> to vector<2x8x8xf32>
    %33 = tpu.concatenate %29, %30, %31, %32 in 1 : vector<2x8x8xf32>, vector<2x8x8xf32>, vector<2x8x8xf32>, vector<2x8x8xf32> -> vector<2x32x8xf32>
    %34 = vector.extract_strided_slice %26 {offsets = [0, 0, 0], sizes = [2, 8, 8], strides = [1, 1, 1]} : vector<2x8x32xf32> to vector<2x8x8xf32>
    %35 = vector.extract_strided_slice %26 {offsets = [0, 0, 8], sizes = [2, 8, 8], strides = [1, 1, 1]} : vector<2x8x32xf32> to vector<2x8x8xf32>
    %36 = vector.extract_strided_slice %26 {offsets = [0, 0, 16], sizes = [2, 8, 8], strides = [1, 1, 1]} : vector<2x8x32xf32> to vector<2x8x8xf32>
    %37 = vector.extract_strided_slice %26 {offsets = [0, 0, 24], sizes = [2, 8, 8], strides = [1, 1, 1]} : vector<2x8x32xf32> to vector<2x8x8xf32>
    %38 = tpu.concatenate %34, %35, %36, %37 in 1 : vector<2x8x8xf32>, vector<2x8x8xf32>, vector<2x8x8xf32>, vector<2x8x8xf32> -> vector<2x32x8xf32>
    %39 = vector.extract_strided_slice %28 {offsets = [0, 0, 0], sizes = [2, 8, 8], strides = [1, 1, 1]} : vector<2x8x32xf32> to vector<2x8x8xf32>
    %40 = vector.extract_strided_slice %28 {offsets = [0, 0, 8], sizes = [2, 8, 8], strides = [1, 1, 1]} : vector<2x8x32xf32> to vector<2x8x8xf32>
    %41 = vector.extract_strided_slice %28 {offsets = [0, 0, 16], sizes = [2, 8, 8], strides = [1, 1, 1]} : vector<2x8x32xf32> to vector<2x8x8xf32>
    %42 = vector.extract_strided_slice %28 {offsets = [0, 0, 24], sizes = [2, 8, 8], strides = [1, 1, 1]} : vector<2x8x32xf32> to vector<2x8x8xf32>
    %43 = tpu.concatenate %39, %40, %41, %42 in 1 : vector<2x8x8xf32>, vector<2x8x8xf32>, vector<2x8x8xf32>, vector<2x8x8xf32> -> vector<2x32x8xf32>
    %44 = tpu.iota {dimensions = array<i32: 0>} : vector<32x32xi32>
    %45 = tpu.iota {dimensions = array<i32: 1>} : vector<32x32xi32>
    %c-8_i32 = arith.constant -8 : i32
    %46 = vector.broadcast %c-8_i32 : i32 to vector<32x32xi32>
    %47 = arith.andi %44, %46 : vector<32x32xi32>
    %c-8_i32_12 = arith.constant -8 : i32
    %48 = vector.broadcast %c-8_i32_12 : i32 to vector<32x32xi32>
    %49 = arith.andi %45, %48 : vector<32x32xi32>
    %50 = arith.cmpi eq, %47, %49 : vector<32x32xi32>
    %c7_i32 = arith.constant 7 : i32
    %51 = vector.broadcast %c7_i32 : i32 to vector<32x32xi32>
    %52 = arith.andi %45, %51 : vector<32x32xi32>
    %c7_i32_13 = arith.constant 7 : i32
    %53 = vector.broadcast %c7_i32_13 : i32 to vector<32x32xi32>
    %54 = arith.andi %44, %53 : vector<32x32xi32>
    %55 = arith.cmpi sle, %52, %54 : vector<32x32xi32>
    %56 = arith.andi %50, %55 : vector<32x32xi1>
    %cst_14 = arith.constant 0.000000e+00 : f32
    %cst_15 = arith.constant -1.000000e+09 : f32
    %57 = vector.broadcast %cst_14 : f32 to vector<32x32xf32>
    %58 = vector.broadcast %cst_15 : f32 to vector<32x32xf32>
    %59 = arith.select %56, %57, %58 : vector<32x32xi1>, vector<32x32xf32>
    "tpu.trace_start"() <{level = 10 : i32, message = "bqd,bkd->bqk"}> : () -> ()
    %cst_16 = arith.constant dense<0.000000e+00> : vector<2x32x32xf32>
    %60 = tpu.matmul %33, %38, %cst_16 {dimension_numbers = #tpu.dot_dimension_numbers<[2], [2], [1], [1], [0, 0, 0, 1, 1, 1], [0], [0]>} : vector<2x32x8xf32>, vector<2x32x8xf32>, vector<2x32x32xf32> -> vector<2x32x32xf32>
    "tpu.trace_stop"() : () -> ()
    %61 = vector.shape_cast %59 : vector<32x32xf32> to vector<1x32x32xf32>
    %62 = vector.broadcast %61 : vector<1x32x32xf32> to vector<2x32x32xf32>
    %63 = arith.addf %60, %62 : vector<2x32x32xf32>
    %cst_17 = arith.constant dense<0xFF800000> : vector<2x32xf32>
    %64 = vector.multi_reduction <maximumf>, %63, %cst_17 [2] : vector<2x32x32xf32> to vector<2x32xf32>
    %65 = vector.shape_cast %64 : vector<2x32xf32> to vector<2x32x1xf32>
    %66 = vector.broadcast %65 : vector<2x32x1xf32> to vector<2x32x32xf32>
    %67 = arith.subf %63, %66 : vector<2x32x32xf32>
    %68 = math.exp %67 : vector<2x32x32xf32>
    %cst_18 = arith.constant dense<0.000000e+00> : vector<2x32xf32>
    %69 = vector.multi_reduction <add>, %68, %cst_18 [2] : vector<2x32x32xf32> to vector<2x32xf32>
    %70 = vector.shape_cast %69 : vector<2x32xf32> to vector<2x32x1xf32>
    %71 = tpu.reciprocal %70 {approx = true} : vector<2x32x1xf32> -> vector<2x32x1xf32>
    %72 = vector.broadcast %71 : vector<2x32x1xf32> to vector<2x32x32xf32>
    %73 = arith.mulf %68, %72 : vector<2x32x32xf32>
    "tpu.trace_start"() <{level = 10 : i32, message = "bqk,bkd->bqd"}> : () -> ()
    %cst_19 = arith.constant dense<0.000000e+00> : vector<2x32x8xf32>
    %74 = tpu.matmul %73, %43, %cst_19 {dimension_numbers = #tpu.dot_dimension_numbers<[2], [1], [1], [2], [0, 0, 0, 1, 1, 2], [0], [0]>} : vector<2x32x32xf32>, vector<2x32x8xf32>, vector<2x32x8xf32> -> vector<2x32x8xf32>
    "tpu.trace_stop"() : () -> ()
    %75 = vector.extract_strided_slice %74 {offsets = [0, 0, 0], sizes = [2, 8, 8], strides = [1, 1, 1]} : vector<2x32x8xf32> to vector<2x8x8xf32>
    %76 = vector.extract_strided_slice %74 {offsets = [0, 8, 0], sizes = [2, 8, 8], strides = [1, 1, 1]} : vector<2x32x8xf32> to vector<2x8x8xf32>
    %77 = vector.extract_strided_slice %74 {offsets = [0, 16, 0], sizes = [2, 8, 8], strides = [1, 1, 1]} : vector<2x32x8xf32> to vector<2x8x8xf32>
    %78 = vector.extract_strided_slice %74 {offsets = [0, 24, 0], sizes = [2, 8, 8], strides = [1, 1, 1]} : vector<2x32x8xf32> to vector<2x8x8xf32>
    %79 = tpu.concatenate %75, %76, %77, %78 in 2 : vector<2x8x8xf32>, vector<2x8x8xf32>, vector<2x8x8xf32>, vector<2x8x8xf32> -> vector<2x8x32xf32>
    %80 = vector.shape_cast %79 : vector<2x8x32xf32> to vector<16x32xf32>
    %81 = arith.truncf %80 : vector<16x32xf32> to vector<16x32xbf16>
    %c0_20 = arith.constant 0 : index
    %c0_21 = arith.constant 0 : index
    %c0_22 = arith.constant 0 : index
    %82 = vector.load %arg7[%c0_20, %c0_21, %c0_22] : memref<1x32x32xbf16, #tpu.memory_space<vmem>>, vector<1x32x32xbf16>
    %83 = vector.shape_cast %82 : vector<1x32x32xbf16> to vector<32x32xbf16>
    %cst_23 = arith.constant dense<0.000000e+00> : vector<16x32xf32>
    %84 = tpu.matmul %81, %83, %cst_23 {dimension_numbers = #tpu.dot_dimension_numbers<[1], [0], [0], [1], [0, 0, 1, 1], [], []>} : vector<16x32xbf16>, vector<32x32xbf16>, vector<16x32xf32> -> vector<16x32xf32>
    %85 = vector.broadcast %7 : vector<1x32xf32> to vector<16x32xf32>
    %86 = arith.addf %84, %85 : vector<16x32xf32>
    %87 = arith.addf %3, %86 : vector<16x32xf32>
    %cst_24 = arith.constant dense<0.000000e+00> : vector<16xf32>
    %88 = vector.multi_reduction <add>, %87, %cst_24 [1] : vector<16x32xf32> to vector<16xf32>
    %89 = vector.shape_cast %88 : vector<16xf32> to vector<16x1xf32>
    %cst_25 = arith.constant 3.200000e+01 : f32
    %90 = vector.broadcast %cst_25 : f32 to vector<16x1xf32>
    %91 = arith.divf %89, %90 : vector<16x1xf32>
    %92 = vector.broadcast %91 : vector<16x1xf32> to vector<16x32xf32>
    %93 = arith.subf %87, %92 : vector<16x32xf32>
    %94 = arith.mulf %93, %93 : vector<16x32xf32>
    %cst_26 = arith.constant dense<0.000000e+00> : vector<16xf32>
    %95 = vector.multi_reduction <add>, %94, %cst_26 [1] : vector<16x32xf32> to vector<16xf32>
    %96 = vector.shape_cast %95 : vector<16xf32> to vector<16x1xf32>
    %cst_27 = arith.constant 3.200000e+01 : f32
    %97 = vector.broadcast %cst_27 : f32 to vector<16x1xf32>
    %98 = arith.divf %96, %97 : vector<16x1xf32>
    %99 = vector.broadcast %91 : vector<16x1xf32> to vector<16x32xf32>
    %100 = arith.subf %87, %99 : vector<16x32xf32>
    %cst_28 = arith.constant 9.99999974E-6 : f32
    %101 = vector.broadcast %cst_28 : f32 to vector<16x1xf32>
    %102 = arith.addf %98, %101 : vector<16x1xf32>
    %103 = math.rsqrt %102 : vector<16x1xf32>
    %104 = vector.broadcast %103 : vector<16x1xf32> to vector<16x32xf32>
    %105 = arith.mulf %100, %104 : vector<16x32xf32>
    %106 = vector.broadcast %8 : vector<1x32xf32> to vector<16x32xf32>
    %107 = arith.mulf %105, %106 : vector<16x32xf32>
    %108 = vector.broadcast %9 : vector<1x32xf32> to vector<16x32xf32>
    %109 = arith.addf %107, %108 : vector<16x32xf32>
    %110 = arith.truncf %109 : vector<16x32xf32> to vector<16x32xbf16>
    %c0_29 = arith.constant 0 : index
    %c0_30 = arith.constant 0 : index
    %c0_31 = arith.constant 0 : index
    %111 = vector.load %arg8[%c0_29, %c0_30, %c0_31] : memref<1x32x2048xbf16, #tpu.memory_space<vmem>>, vector<1x32x2048xbf16>
    %112 = vector.shape_cast %111 : vector<1x32x2048xbf16> to vector<32x2048xbf16>
    %cst_32 = arith.constant dense<0.000000e+00> : vector<16x2048xf32>
    %113 = tpu.matmul %110, %112, %cst_32 {dimension_numbers = #tpu.dot_dimension_numbers<[1], [0], [0], [1], [0, 0, 1, 1], [], []>} : vector<16x32xbf16>, vector<32x2048xbf16>, vector<16x2048xf32> -> vector<16x2048xf32>
    %114 = arith.truncf %113 : vector<16x2048xf32> to vector<16x2048xbf16>
    %115 = arith.truncf %14 : vector<1x2048xf32> to vector<1x2048xbf16>
    %116 = vector.broadcast %115 : vector<1x2048xbf16> to vector<16x2048xbf16>
    %117 = arith.addf %114, %116 : vector<16x2048xbf16>
    %cst_33 = arith.constant 0.000000e+00 : bf16
    %118 = vector.broadcast %cst_33 : bf16 to vector<16x2048xbf16>
    %119 = arith.maximumf %117, %118 : vector<16x2048xbf16>
    %c0_34 = arith.constant 0 : index
    %c0_35 = arith.constant 0 : index
    %c0_36 = arith.constant 0 : index
    %120 = vector.load %arg9[%c0_34, %c0_35, %c0_36] : memref<1x2048x32xbf16, #tpu.memory_space<vmem>>, vector<1x2048x32xbf16>
    %121 = vector.shape_cast %120 : vector<1x2048x32xbf16> to vector<2048x32xbf16>
    %cst_37 = arith.constant dense<0.000000e+00> : vector<16x32xf32>
    %122 = tpu.matmul %119, %121, %cst_37 {dimension_numbers = #tpu.dot_dimension_numbers<[1], [0], [0], [1], [0, 0, 1, 1], [], []>} : vector<16x2048xbf16>, vector<2048x32xbf16>, vector<16x32xf32> -> vector<16x32xf32>
    %123 = vector.broadcast %10 : vector<1x32xf32> to vector<16x32xf32>
    %124 = arith.addf %122, %123 : vector<16x32xf32>
    %125 = arith.addf %109, %124 : vector<16x32xf32>
    %cst_38 = arith.constant dense<0.000000e+00> : vector<16xf32>
    %126 = vector.multi_reduction <add>, %125, %cst_38 [1] : vector<16x32xf32> to vector<16xf32>
    %127 = vector.shape_cast %126 : vector<16xf32> to vector<16x1xf32>
    %cst_39 = arith.constant 3.200000e+01 : f32
    %128 = vector.broadcast %cst_39 : f32 to vector<16x1xf32>
    %129 = arith.divf %127, %128 : vector<16x1xf32>
    %130 = vector.broadcast %129 : vector<16x1xf32> to vector<16x32xf32>
    %131 = arith.subf %125, %130 : vector<16x32xf32>
    %132 = arith.mulf %131, %131 : vector<16x32xf32>
    %cst_40 = arith.constant dense<0.000000e+00> : vector<16xf32>
    %133 = vector.multi_reduction <add>, %132, %cst_40 [1] : vector<16x32xf32> to vector<16xf32>
    %134 = vector.shape_cast %133 : vector<16xf32> to vector<16x1xf32>
    %cst_41 = arith.constant 3.200000e+01 : f32
    %135 = vector.broadcast %cst_41 : f32 to vector<16x1xf32>
    %136 = arith.divf %134, %135 : vector<16x1xf32>
    %137 = vector.broadcast %129 : vector<16x1xf32> to vector<16x32xf32>
    %138 = arith.subf %125, %137 : vector<16x32xf32>
    %cst_42 = arith.constant 9.99999974E-6 : f32
    %139 = vector.broadcast %cst_42 : f32 to vector<16x1xf32>
    %140 = arith.addf %136, %139 : vector<16x1xf32>
    %141 = math.rsqrt %140 : vector<16x1xf32>
    %142 = vector.broadcast %141 : vector<16x1xf32> to vector<16x32xf32>
    %143 = arith.mulf %138, %142 : vector<16x32xf32>
    %144 = vector.broadcast %11 : vector<1x32xf32> to vector<16x32xf32>
    %145 = arith.mulf %143, %144 : vector<16x32xf32>
    %146 = vector.broadcast %12 : vector<1x32xf32> to vector<16x32xf32>
    %147 = arith.addf %145, %146 : vector<16x32xf32>
    %c0_43 = arith.constant 0 : index
    %c0_44 = arith.constant 0 : index
    %148 = vector.load %arg13[%c0_43, %c0_44] : memref<16x32xf32, #tpu.memory_space<vmem>>, vector<16x32xf32>
    tpu.vector_store %arg13[%c0_43, %c0_44], %147 {strides = array<i32>} : memref<16x32xf32, #tpu.memory_space<vmem>>, vector<16x32xf32>,
    %c3_i32 = arith.constant 3 : i32
    %149 = arith.cmpi eq, %arg0, %c3_i32 : i32
    %150 = arith.extui %149 : i1 to i32
    %c0_i32_45 = arith.constant 0 : i32
    %151 = arith.cmpi ne, %150, %c0_i32_45 : i32
    scf.if %151 {
      %c0_46 = arith.constant 0 : index
      %c0_47 = arith.constant 0 : index
      %152 = vector.load %arg4[%c0_46, %c0_47] : memref<32x128xf32, #tpu.memory_space<vmem>>, vector<32x128xf32>
      %cst_48 = arith.constant dense<0.000000e+00> : vector<16x128xf32>
      %153 = tpu.matmul %147, %152, %cst_48 {dimension_numbers = #tpu.dot_dimension_numbers<[1], [0], [0], [1], [0, 0, 1, 1], [], []>} : vector<16x32xf32>, vector<32x128xf32>, vector<16x128xf32> -> vector<16x128xf32>
      %c0_49 = arith.constant 0 : index
      %c0_50 = arith.constant 0 : index
      %154 = vector.load %arg5[%c0_49, %c0_50] : memref<1x128xf32, #tpu.memory_space<vmem>>, vector<1x128xf32>
      %155 = vector.broadcast %154 : vector<1x128xf32> to vector<16x128xf32>
      %156 = arith.addf %153, %155 : vector<16x128xf32>
      %cst_51 = arith.constant dense<0xFF800000> : vector<16xf32>
      %157 = vector.multi_reduction <maximumf>, %156, %cst_51 [1] : vector<16x128xf32> to vector<16xf32>
      %158 = vector.shape_cast %157 : vector<16xf32> to vector<16x1xf32>
      %159 = vector.broadcast %158 : vector<16x1xf32> to vector<16x128xf32>
      %160 = arith.subf %156, %159 : vector<16x128xf32>
      %161 = math.exp %160 : vector<16x128xf32>
      %cst_52 = arith.constant dense<0.000000e+00> : vector<16xf32>
      %162 = vector.multi_reduction <add>, %161, %cst_52 [1] : vector<16x128xf32> to vector<16xf32>
      %163 = vector.shape_cast %162 : vector<16xf32> to vector<16x1xf32>
      %164 = math.log %163 : vector<16x1xf32>
      %165 = vector.broadcast %164 : vector<16x1xf32> to vector<16x128xf32>
      %166 = arith.subf %160, %165 : vector<16x128xf32>
      %c0_53 = arith.constant 0 : index
      %c0_54 = arith.constant 0 : index
      %167 = vector.load %arg12[%c0_53, %c0_54] : memref<16x128xf32, #tpu.memory_space<vmem>>, vector<16x128xf32>
      tpu.vector_store %arg12[%c0_53, %c0_54], %166 {strides = array<i32>} : memref<16x128xf32, #tpu.memory_space<vmem>>, vector<16x128xf32>,
    } else {
    }
    return
  }
  func.func @transform_0(%arg0: i32) -> (i32, i32) {
    %c0_i32 = arith.constant 0 : i32
    %c0_i32_0 = arith.constant 0 : i32
    %c0_i32_1 = arith.constant 0 : i32
    return %c0_i32, %c0_i32_0 : i32, i32
  }
  func.func @transform_1(%arg0: i32) -> (i32, i32) {
    %c0_i32 = arith.constant 0 : i32
    %c0_i32_0 = arith.constant 0 : i32
    %c0_i32_1 = arith.constant 0 : i32
    return %c0_i32, %c0_i32_0 : i32, i32
  }
  func.func @transform_2(%arg0: i32) -> (i32, i32) {
    %c0_i32 = arith.constant 0 : i32
    %c0_i32_0 = arith.constant 0 : i32
    %c0_i32_1 = arith.constant 0 : i32
    return %c0_i32, %c0_i32_0 : i32, i32
  }
  func.func @transform_3(%arg0: i32) -> (i32, i32) {
    %c0_i32 = arith.constant 0 : i32
    %c0_i32_0 = arith.constant 0 : i32
    %c0_i32_1 = arith.constant 0 : i32
    return %c0_i32, %c0_i32_0 : i32, i32
  }
  func.func @transform_4(%arg0: i32) -> (i32, i32) {
    %c0_i32 = arith.constant 0 : i32
    %c0_i32_0 = arith.constant 0 : i32
    %c0_i32_1 = arith.constant 0 : i32
    return %c0_i32, %c0_i32_0 : i32, i32
  }
  func.func @transform_5(%arg0: i32) -> (i32, i32, i32) {
    %c0_i32 = arith.constant 0 : i32
    %c0_i32_0 = arith.constant 0 : i32
    %c0_i32_1 = arith.constant 0 : i32
    return %arg0, %c0_i32, %c0_i32_0 : i32, i32, i32
  }
  func.func @transform_6(%arg0: i32) -> (i32, i32, i32) {
    %c0_i32 = arith.constant 0 : i32
    %c0_i32_0 = arith.constant 0 : i32
    %c0_i32_1 = arith.constant 0 : i32
    return %arg0, %c0_i32, %c0_i32_0 : i32, i32, i32
  }
  func.func @transform_7(%arg0: i32) -> (i32, i32, i32) {
    %c0_i32 = arith.constant 0 : i32
    %c0_i32_0 = arith.constant 0 : i32
    %c0_i32_1 = arith.constant 0 : i32
    return %arg0, %c0_i32, %c0_i32_0 : i32, i32, i32
  }
  func.func @transform_8(%arg0: i32) -> (i32, i32, i32) {
    %c0_i32 = arith.constant 0 : i32
    %c0_i32_0 = arith.constant 0 : i32
    %c0_i32_1 = arith.constant 0 : i32
    return %arg0, %c0_i32, %c0_i32_0 : i32, i32, i32
  }
  func.func @transform_9(%arg0: i32) -> (i32, i32, i32) {
    %c0_i32 = arith.constant 0 : i32
    %c0_i32_0 = arith.constant 0 : i32
    %c0_i32_1 = arith.constant 0 : i32
    return %arg0, %c0_i32, %c0_i32_0 : i32, i32, i32
  }
  func.func @transform_10(%arg0: i32) -> (i32, i32, i32) {
    %c0_i32 = arith.constant 0 : i32
    %c0_i32_0 = arith.constant 0 : i32
    %c0_i32_1 = arith.constant 0 : i32
    return %arg0, %c0_i32, %c0_i32_0 : i32, i32, i32
  }
  func.func @transform_11(%arg0: i32) -> (i32, i32) {
    %c0_i32 = arith.constant 0 : i32
    %c0_i32_0 = arith.constant 0 : i32
    %c0_i32_1 = arith.constant 0 : i32
    return %c0_i32, %c0_i32_0 : i32, i32
  }
}

</mosaic_0001>

<bundles_post_ra>
// kernel: tpu_custom_call.1
= control target key start
LH: loop header
LB: loop body
LE: loop exit
PB: predicated region body
PF: predicated region fallthrough
CT: control target
= control target key end

     0   :  { %s4986_s0 = inlined_call_operand.vmem [shape: s32[16,1], index: 0, kind: input, shape index: {}]   ;;  %s4987_s1 = inlined_call_operand.vmem [shape: f32[16,32], index: 1, kind: input, shape index: {}]   ;;  %s4988_s2 = inlined_call_operand.vmem [shape: f32[50,32], index: 2, kind: input, shape index: {}]   ;;  %s4989_s3 = inlined_call_operand.vmem [shape: f32[32,128], index: 3, kind: input, shape index: {}]   ;;  %s4990_s4 = inlined_call_operand.vmem [shape: f32[1,128], index: 4, kind: input, shape index: {}]   ;;  %s4991_s5 = inlined_call_operand.vmem [shape: bf16[4,32,96], index: 5, kind: input, shape index: {}]   ;;  %s4992_s6 = inlined_call_operand.vmem [shape: bf16[4,32,32], index: 6, kind: input, shape index: {}]   ;;  %s4993_s7 = inlined_call_operand.vmem [shape: bf16[4,32,2048], index: 7, kind: input, shape index: {}]   ;;  %s4994_s8 = inlined_call_operand.vmem [shape: bf16[4,2048,32], index: 8, kind: input, shape index: {}]   ;;  %s4995_s9 = inlined_call_operand.vmem [shape: f32[4,1,2048], index: 9, kind: input, shape index: {}]   ;;  %s4996_s10 = inlined_call_operand.vmem [shape: f32[4,3,96], index: 10, kind: input, shape index: {}]   ;;  %s4997_s11 = inlined_call_operand.hbm [shape: f32[16,128], index: 11, kind: output, shape index: {}]  }
   0x1   :  { %4998 = sst [smem:[#allocation6_spill]] %s4991_s5 }
   0x2   :  { %4999 = sst [smem:[#allocation7_spill]] %s4992_s6 }
   0x3   :  { %16 = vsyncpa [#allocation4], 0  ;;  %s4438_s17 = smov 0  }
   0x4 LB: > { %s4444_s18 = sadd.s32 4294967295, %s4362_s17   ;;  %p3310_p0 = scmp.ge.s32.totalorder %s4362_s17, 1  ;;  %s4362_s17 = sphi %s4438_s17, %s22_s17  }
   0x5   : > { %p381_p1 = scmp.lt.s32.totalorder %s4362_s17, 5 }
   0x7   : > { %p382_p2 = pnand %p3310_p0, %p381_p1 }
   0x8   : > { %p439_p3 = scmp.lt.s32.totalorder (!%p382_p2), %s4444_s18, 3  ;;  %s5000_s5 = sld [smem:[#allocation6_spill]] (!%p382_p2) }
   0x9   : > { %385 = sbr.rel (%p382_p2) target bundleno = 2835 (0xb13), region = 64  ;;  %s5001_s6 = sld [smem:[#allocation7_spill]] (!%p382_p2) }
   0xa   : > { %p3321_p4 = scmp.ne.s32.totalorder (!%p382_p2), %s4444_s18, 0 }
   0xe   : > { %s440_s19 = scalar_select %p439_p3, %s4444_s18, 3 }
  0x10   : > { %s4030_s20 = sshll.u32 %s440_s19, 4  ;;  %s4032_s21 = sshll.u32 %s440_s19, 8 }
  0x11   : > { %s4453_s24 = scalar_lea.vmem %s5000_s5, %s4030_s20  ;;  %s4458_s27 = scalar_lea.vmem %s5001_s6, %s4030_s20 }
  0x12   : > { %s4463_s30 = scalar_lea.vmem %s4993_s7, %s4032_s21  ;;  %s4033_s12 = sshll.u32 %s440_s19, 10 }
  0x13   : > { %s4468_s15 = scalar_lea.vmem %s4994_s8, %s4033_s12  ;;  %s4473_s23 = scalar_lea.vmem %s4995_s9, %s4030_s20 }
  0x14   : > { %s3320_s5 = sshll.u32 %s440_s19, 2  ;;  %471 = sbr.rel (%p3321_p4) target bundleno = 281 (0x119), region = 68 }
  0x15   : > { %s4478_s6 = scalar_lea.vmem %s4996_s10, %s3320_s5 }
  0x19   : > { %v472_v0 = vld [vmem:[%s4986_s0] sm:$0xff]  ;;  %v492_v1 = vld [vmem:[%s4988_s2 + $0x30] sm:$0x3]  ;;  %vm502_vm0 = vcmask 1041408   ;;  %v4364_v2 = vmov 0   ;;  %v491_v3 = vld [vmem:[%s4988_s2 + $0x28] sm:$0xff]  ;;  %v474_v10 = vlaneseq }
  0x1a   : > { %4237 = vset.pattern.permute.xlu0 %v4364_v2  ;;  %3322 = vmatpush.msk.msra.mxu0 %vm502_vm0, %v492_v1  ;;  %v490_v4 = vld [vmem:[%s4988_s2 + $0x20] sm:$0xff]  ;;  %v489_v5 = vld [vmem:[%s4988_s2 + $0x18] sm:$0xff]  ;;  %v488_v6 = vld [vmem:[%s4988_s2 + $0x10] sm:$0xff]  ;;  %vm495_vm1 = vcmask 408576   ;;  %v4365_v13 = vmov 0.0   ;;  %vm529_vm4 = vcmask 261120  }
  0x1b   : > { %477 = vperm.xlu0 %4237, %v472_v0   ;;  %4198 = vmatpush.msk.msra.mxu1 %vm502_vm0, %v492_v1  ;;  %v473_v7 = vld [vmem:[%s4986_s0 + $0x8] sm:$0xff]  ;;  %v486_v9 = vld [vmem:[%s4988_s2] sm:$0xff]  ;;  %v475_v11 = vand.u32 127, %v474_v10 }
  0x1c   : > { %516 = vmatpush.msra.mxu0 %v491_v3  ;;  %v487_v8 = vld [vmem:[%s4988_s2 + $0x8] sm:$0xff]  ;;  %v493_v17 = vld [vmem:[%s4987_s1] sm:$0xff] }
  0x1d   : > { %4199 = vmatpush.msra.mxu1 %v491_v3  ;;  %v494_v20 = vld [vmem:[%s4987_s1 + $0x8] sm:$0xff] }
  0x1e   : > { %517 = vmatpush.msra.mxu0 %v490_v4 }
  0x1f   : > { %4200 = vmatpush.msra.mxu1 %v490_v4 }
  0x20   : > { %518 = vmatpush.msra.mxu0 %v489_v5 }
  0x21   : > { %4201 = vmatpush.msra.mxu1 %v489_v5 }
  0x22   : > { %519 = vmatpush.msra.mxu0 %v488_v6 }
  0x23   : > { %480 = vperm.xlu0 %4237, %v473_v7   ;;  %4202 = vmatpush.msra.mxu1 %v488_v6 }
  0x24   : > { %520 = vmatpush.msra.mxu0 %v487_v8 }
  0x25   : > { %4203 = vmatpush.msra.mxu1 %v487_v8 }
  0x26   : > { %521 = vmatpush.msra.mxu0 %v486_v9 }
  0x27   : > { %4204 = vmatpush.msra.mxu1 %v486_v9 }
  0x8d   : > { %v478_v12 = vpop.permute.xlu0 %477 }
  0x8e   : > { %vm482_vm2 = vcmp.eq.s32.totalorder %v475_v11, %v478_v12 }
  0x8f   : > { %v484_v14 = vsel %vm482_vm2, 1.0, %v4365_v13 }
  0x90   : > { %3323 = vmatmul.msk.f32.vlgmr.msra.gmra.mxu0 %vm495_vm1, %v484_v14 }
  0x95   : > { %v481_v15 = vpop.permute.xlu0 %480 }
  0x96   : > { %vm483_vm3 = vcmp.eq.s32.totalorder %v475_v11, %v481_v15 }
  0x97   : > { %v485_v16 = vsel %vm483_vm3, 1.0, %v4365_v13 }
  0x98   : > { %3324 = vmatmul.msk.f32.vlgmr.msra.gmra.mxu1 %vm495_vm1, %v485_v16 }
 0x10d   : > { %v523_v18 = vpop.f32.mrf.mxu0 }
 0x10e   : > { %v524_v19 = vadd.f32 %v523_v18, %v493_v17 }
 0x110   : > { %530 = vst.msk [vmem:[#allocation2] sm:$0xff] %vm529_vm4, %v524_v19 }
 0x115   : > { %v526_v21 = vpop.f32.mrf.mxu1 }
 0x116   : > { %v527_v22 = vadd.f32 %v526_v21, %v494_v20 }
 0x118   : > { %531 = vst.msk [vmem:[#allocation2 + $0x8] sm:$0xff] %vm529_vm4, %v527_v22 }
 0x119 PF: > { %v4035_v23 = vld [vmem:[%s4453_s24 + $0x8] sm:$0xff]  ;;  %v4034_v24 = vld [vmem:[%s4453_s24] sm:$0xff]  ;;  %vm555_vm5 = vcmask 261120   ;;  %s4366_s16 = smov 120   ;;  %s4367_s24 = smov 112   ;;  %vm644_vm6 = vcmask 64512   ;;  %v603_v60 = vlaneseq }
 0x11a   : > { %565 = vmatpush.bf16.msra.mxu0 %v4035_v23  ;;  %v4516_v25 = vld [vmem:[#allocation2] sm:$0xff]  ;;  %s4368_s22 = smov 104   ;;  %s4370_s25 = smov 64   ;;  %v4371_v6 = vmov -1e+09   ;;  %vm963_vm3 = vcmask 130048  }
 0x11b   : > { %v4524_v28 = vld [vmem:[%s4478_s6] sm:$0x7]  ;;  %s4369_s6 = smov 96   ;;  %v604_v61 = vshrl.u32 %v603_v60, 7  ;;  %v609_v62 = vand.u32 127, %v603_v60  ;;  %s4372_s26 = smov 8  }
 0x11c   : > { %v542_v29 = vperm.slane %v4524_v28, 0  ;;  %s4373_s21 = smov 16   ;;  %s4374_s28 = smov 24   ;;  %vm966_vm4 = vcmask 195584  }
 0x11d   : > { %v610_v63 = vand.u32 4294967288, %v604_v61  ;;  %v614_v0 = vand.u32 4294967288, %v609_v62  ;;  %v619_v1 = vand.u32 7, %v609_v62  ;;  %v620_v2 = vand.u32 7, %v604_v61  ;;  %p4023_p5 = scmp.ne.s32.totalorder %s4444_s18, 3 }
 0x11e   : > { %566 = vmatpush.bf16.msra.mxu0 %v4034_v24  ;;  %v605_v3 = vadd.s32 8, %v604_v61  ;;  %v606_v9 = vadd.s32 16, %v604_v61  ;;  %v607_v16 = vadd.s32 24, %v604_v61 }
 0x11f   : > { %v4518_v26 = vld [vmem:[#allocation2 + $0x8] sm:$0xff]  ;;  %vm615_vm7 = vcmp.eq.s32.totalorder %v610_v63, %v614_v0  ;;  %vm624_vm8 = vcmp.le.s32.totalorder %v619_v1, %v620_v2 }
 0x120   : > { %v537_v27 = vpack.c.bf16 %v4518_v26, %v4516_v25  ;;  %vm628_vm9 = vmand %vm615_vm7, %vm624_vm8  ;;  %v611_v4 = vand.u32 4294967288, %v605_v3  ;;  %v621_v5 = vand.u32 7, %v605_v3  ;;  %v612_v12 = vand.u32 4294967288, %v606_v9 }
 0x121   : > { %v632_v7 = vsel %vm628_vm9, 0.0, %v4371_v6  ;;  %v622_v13 = vand.u32 7, %v606_v9  ;;  %v613_v21 = vand.u32 4294967288, %v607_v16  ;;  %v623_v22 = vand.u32 7, %v607_v16 }
 0x122   : > { %3333 = vmatmul.msk.bf16.vlgmr.msra.gmra.mxu0 %vm555_vm5, %v537_v27  ;;  %vm616_vm10 = vcmp.eq.s32.totalorder %v611_v4, %v614_v0  ;;  %vm625_vm11 = vcmp.le.s32.totalorder %v619_v1, %v621_v5  ;;  %vm617_vm13 = vcmp.eq.s32.totalorder %v612_v12, %v614_v0 }
 0x123   : > { %vm629_vm12 = vmand %vm616_vm10, %vm625_vm11  ;;  %vm626_vm14 = vcmp.le.s32.totalorder %v619_v1, %v622_v13  ;;  %vm618_vm0 = vcmp.eq.s32.totalorder %v613_v21, %v614_v0  ;;  %vm627_vm1 = vcmp.le.s32.totalorder %v619_v1, %v623_v22 }
 0x124   : > { %v633_v14 = vsel %vm629_vm12, 0.0, %v4371_v6  ;;  %vm630_vm15 = vmand %vm617_vm13, %vm626_vm14 }
 0x125   : > { %v634_v24 = vsel %vm630_vm15, 0.0, %v4371_v6  ;;  %vm631_vm2 = vmand %vm618_vm0, %vm627_vm1 }
 0x19f   : > { %v568_v30 = vpop.f32.mrf.mxu0 }
 0x1a0   : > { %v4527_v31 = vadd.f32 %v568_v30, %v542_v29 }
 0x1a2   : > { %591 = vrot.lane.b32.xlu2 %v4527_v31, %s4366_s16  ;;  %595 = vrot.lane.b32.xlu1 %v4527_v31, %s4367_s24  ;;  %v573_v40 = vmul.f32 0.35355338, %v4527_v31 }
 0x1a3   : > { %599 = vrot.lane.b32.xlu0 %v4527_v31, %s4368_s22 }
 0x1a7   : > { %v570_v32 = vpop.f32.mrf.mxu0 }
 0x1a8   : > { %v4533_v33 = vadd.f32 %v570_v32, %v542_v29 }
 0x1aa   : > { %593 = vrot.lane.b32.xlu2 %v4533_v33, %s4366_s16  ;;  %597 = vrot.lane.b32.xlu1 %v4533_v33, %s4367_s24  ;;  %v574_v41 = vmul.f32 0.35355338, %v4533_v33 }
 0x1ab   : > { %601 = vrot.lane.b32.xlu0 %v4533_v33, %s4368_s22 }
 0x1fc   : > { %v4539_v34 = vpop.permute.xlu2 %591 }
 0x204   : > { %v4543_v37 = vpop.permute.xlu2 %593 }
 0x214   : > { %v596_v35 = vpop.permute.xlu1 %595 }
 0x215   : > { %v600_v36 = vpop.permute.xlu0 %599  ;;  %640 = vrot.lane.b32.xlu2 %v596_v35, %s4369_s6 }
 0x216   : > { %642 = vrot.lane.b32.xlu0 %v600_v36, %s4369_s6  ;;  %v4238_v42 = vpack.i.bf16 %v596_v35, %v600_v36  ;;  %v635_v35 = vsel %vm631_vm2, 0.0, %v4371_v6  ;;  %v4243_v6 = vpack.i.bf16 %v4527_v31, %v4539_v34 }
 0x21c   : > { %v4545_v38 = vpop.permute.xlu1 %597 }
 0x21d   : > { %v4547_v39 = vpop.permute.xlu0 %601  ;;  %692 = vrot.lane.b32.xlu2 %v4543_v37, %s4369_s6 }
 0x21e   : > { %694 = vrot.lane.b32.xlu0 %v4545_v38, %s4369_s6  ;;  %696 = vrot.lane.b32.xlu1 %v4547_v39, %s4369_s6  ;;  %v4248_v12 = vpack.i.bf16 %v4545_v38, %v4547_v39 }
 0x225   : > { %577 = vrot.lane.b32.xlu2 %v573_v40, %s4366_s16 }
 0x226   : > { %636 = vrot.lane.b32.xlu0 %v4527_v31, %s4369_s6  ;;  %638 = vrot.lane.b32.xlu1 %v4539_v34, %s4369_s6 }
 0x22d   : > { %583 = vrot.lane.b32.xlu2 %v574_v41, %s4367_s24 }
 0x22e   : > { %579 = vrot.lane.b32.xlu0 %v574_v41, %s4366_s16  ;;  %690 = vrot.lane.b32.xlu1 %v4533_v33, %s4369_s6 }
 0x236   : > { %585 = vrot.lane.b32.xlu0 %v573_v40, %s4368_s22  ;;  %581 = vrot.lane.b32.xlu1 %v573_v40, %s4367_s24 }
 0x23e   : > { %587 = vrot.lane.b32.xlu1 %v574_v41, %s4368_s22 }
 0x246   : > { %4239 = vrot.lane.b32.xlu1 %v4238_v42, %s4370_s25 }
 0x26f   : > { %v641_v44 = vpop.permute.xlu2 %640 }
 0x277   : > { %v693_v47 = vpop.permute.xlu2 %692 }
 0x27f   : > { %v578_v51 = vpop.permute.xlu2 %577 }
 0x287   : > { %v584_v55 = vpop.permute.xlu2 %583 }
 0x288   : > { %v643_v43 = vpop.permute.xlu0 %642 }
 0x289   : > { %3334 = vmatpush.xpose.msk.msra.mxu1 %vm644_vm6, %v643_v43 }
 0x28d   : > { %3335 = vmatpush.xpose.msk.msra.mxu1 %vm644_vm6, %v641_v44 }
 0x290   : > { %v697_v45 = vpop.permute.xlu1 %696  ;;  %v695_v46 = vpop.permute.xlu0 %694 }
 0x291   : > { %3342 = vmatpush.xpose.msk.msra.mxu2 %vm644_vm6, %v697_v45 }
 0x295   : > { %3343 = vmatpush.xpose.msk.msra.mxu2 %vm644_vm6, %v695_v46 }
 0x298   : > { %v639_v48 = vpop.permute.xlu1 %638  ;;  %v637_v49 = vpop.permute.xlu0 %636 }
 0x299   : > { %3336 = vmatpush.xpose.msk.msra.mxu1 %vm644_vm6, %v639_v48  ;;  %3344 = vmatpush.xpose.msk.msra.mxu2 %vm644_vm6, %v693_v47 }
 0x29d   : > { %3337 = vmatpush.xpose.msk.msra.mxu1 %vm644_vm6, %v637_v49 }
 0x2a0   : > { %v691_v50 = vpop.permute.xlu1 %690  ;;  %3338 = vmatmul.msk.f32.vlgmr.msra.gmra.mxu1 %vm644_vm6, %v573_v40  ;;  %v580_v53 = vpop.permute.xlu0 %579 }
 0x2a1   : > { %3345 = vmatpush.xpose.msk.msra.mxu2 %vm644_vm6, %v691_v50  ;;  %v4253_v50 = vpack.i.bf16 %v4533_v33, %v4543_v37 }
 0x2a4   : > { %3346 = vmatmul.msk.f32.vlgmr.msra.gmra.mxu2 %vm644_vm6, %v574_v41 }
 0x2a8   : > { %v582_v52 = vpop.permute.xlu1 %581  ;;  %3339 = vmatmul.msk.f32.gmra.mxu1 %vm644_vm6, %v578_v51  ;;  %v586_v56 = vpop.permute.xlu0 %585 }
 0x2ac   : > { %3347 = vmatmul.msk.f32.gmra.mxu2 %vm644_vm6, %v580_v53 }
 0x2b0   : > { %v588_v54 = vpop.permute.xlu1 %587  ;;  %3340 = vmatmul.msk.f32.gmra.mxu1 %vm644_vm6, %v582_v52 }
 0x2b4   : > { %3348 = vmatmul.msk.f32.gmra.mxu2 %vm644_vm6, %v584_v55 }
 0x2b8   : > { %v4240_v57 = vpop.permute.xlu1 %4239  ;;  %3341 = vmatmul.msk.f32.gmra.mxu1 %vm644_vm6, %v586_v56 }
 0x2b9   : > { %v4241_v58 = vunpack.i.l.bf16 %v4240_v57  ;;  %v4242_v59 = vunpack.i.h.bf16 %v4240_v57 }
 0x2bb   : > { %867 = vmatpush.msra.mxu3 %v4241_v58 }
 0x2bc   : > { %3349 = vmatmul.msk.f32.gmra.mxu2 %vm644_vm6, %v588_v54 }
 0x2bd   : > { %868 = vmatpush.msra.mxu3 %v4242_v59 }
 0x31d   : > { %v678_v8 = vpop.f32.mrf.mxu1 }
 0x31e   : > { %v679_v10 = vadd.f32 %v678_v8, %v632_v7 }
 0x320   : > { %v743_v11 = vsel %vm555_vm5, %v679_v10, -inf }
 0x321   : > { %744 = vmax.xlane.f32.xlu2 %v743_v11 }
 0x325   : > { %v681_v15 = vpop.f32.mrf.mxu1 }
 0x326   : > { %v682_v17 = vadd.f32 %v681_v15, %v633_v14 }
 0x327   : > { %v731_v18 = vpop.f32.mrf.mxu2 }
 0x328   : > { %v732_v19 = vadd.f32 %v731_v18, %v632_v7  ;;  %v746_v20 = vsel %vm555_vm5, %v682_v17, -inf }
 0x329   : > { %747 = vmax.xlane.f32.xlu1 %v746_v20 }
 0x32a   : > { %v755_v23 = vsel %vm555_vm5, %v732_v19, -inf }
 0x32b   : > { %756 = vmax.xlane.f32.xlu0 %v755_v23 }
 0x32d   : > { %v684_v27 = vpop.f32.mrf.mxu1 }
 0x32e   : > { %v685_v29 = vadd.f32 %v684_v27, %v634_v24 }
 0x32f   : > { %v734_v30 = vpop.f32.mrf.mxu2 }
 0x330   : > { %v749_v32 = vsel %vm555_vm5, %v685_v29, -inf  ;;  %v735_v36 = vadd.f32 %v734_v30, %v633_v14 }
 0x331   : > { %750 = vmax.xlane.f32.xlu2 %v749_v32 }
 0x332   : > { %v758_v45 = vsel %vm555_vm5, %v735_v36, -inf }
 0x335   : > { %v687_v40 = vpop.f32.mrf.mxu1 }
 0x336   : > { %v688_v41 = vadd.f32 %v687_v40, %v635_v35 }
 0x337   : > { %v737_v42 = vpop.f32.mrf.mxu2 }
 0x338   : > { %v4586_v43 = vadd.f32 %v737_v42, %v634_v24  ;;  %v752_v44 = vsel %vm555_vm5, %v688_v41, -inf }
 0x339   : > { %753 = vmax.xlane.f32.xlu1 %v752_v44  ;;  %759 = vmax.xlane.f32.xlu2 %v758_v45 }
 0x33a   : > { %v761_v46 = vsel %vm555_vm5, %v4586_v43, -inf }
 0x33b   : > { %762 = vmax.xlane.f32.xlu0 %v761_v46 }
 0x33f   : > { %v740_v47 = vpop.f32.mrf.mxu2 }
 0x340   : > { %v741_v48 = vadd.f32 %v740_v47, %v635_v35 }
 0x342   : > { %v764_v49 = vsel %vm555_vm5, %v741_v48, -inf }
 0x343   : > { %765 = vmax.xlane.f32.xlu2 %v764_v49 }
 0x352   : > { %4254 = vrot.lane.b32.xlu1 %v4253_v50, %s4370_s25 }
 0x394   : > { %v745_v51 = vpop.xlane.xlu2 %744 }
 0x395   : > { %v767_v52 = vsub.f32 %v679_v10, %v745_v51 }
 0x397   : > { %v775_v53 = vmul.f32 1.442695, %v767_v52 }
 0x399   : > { %4273 = vpow2.f32 %v775_v53 }
 0x39c   : > { %v748_v54 = vpop.xlane.xlu1 %747 }
 0x39d   : > { %v768_v55 = vsub.f32 %v682_v17, %v748_v54 }
 0x39e   : > { %v757_v56 = vpop.xlane.xlu0 %756 }
 0x39f   : > { %v4596_v57 = vpop.eup %4273  ;;  %v777_v58 = vmul.f32 1.442695, %v768_v55  ;;  %v771_v59 = vsub.f32 %v732_v19, %v757_v56 }
 0x3a0   : > { %v791_v60 = vsel %vm555_vm5, %v4596_v57, 0.0 }
 0x3a1   : > { %4275 = vpow2.f32 %v777_v58  ;;  %792 = vadd.xlane.f32.xlu0 %v791_v60  ;;  %v783_v61 = vmul.f32 1.442695, %v771_v59 }
 0x3a3   : > { %4277 = vpow2.f32 %v783_v61 }
 0x3a4   : > { %v751_v33 = vpop.xlane.xlu2 %750 }
 0x3a5   : > { %v769_v37 = vsub.f32 %v685_v29, %v751_v33 }
 0x3a7   : > { %v4600_v62 = vpop.eup %4275  ;;  %v779_v63 = vmul.f32 1.442695, %v769_v37 }
 0x3a8   : > { %v794_v0 = vsel %vm555_vm5, %v4600_v62, 0.0 }
 0x3a9   : > { %4279 = vpow2.f32 %v779_v63  ;;  %795 = vadd.xlane.f32.xlu2 %v794_v0  ;;  %v4604_v1 = vpop.eup %4277 }
 0x3aa   : > { %v803_v4 = vsel %vm555_vm5, %v4604_v1, 0.0 }
 0x3ac   : > { %v760_v2 = vpop.xlane.xlu2 %759  ;;  %v754_v31 = vpop.xlane.xlu1 %753 }
 0x3ad   : > { %v772_v13 = vsub.f32 %v735_v36, %v760_v2  ;;  %v770_v34 = vsub.f32 %v688_v41, %v754_v31 }
 0x3ae   : > { %v763_v17 = vpop.xlane.xlu0 %762 }
 0x3af   : > { %v4606_v3 = vpop.eup %4279  ;;  %v785_v14 = vmul.f32 1.442695, %v772_v13  ;;  %v781_v15 = vmul.f32 1.442695, %v770_v34  ;;  %v773_v19 = vsub.f32 %v4586_v43, %v763_v17 }
 0x3b0   : > { %v797_v5 = vsel %vm555_vm5, %v4606_v3, 0.0 }
 0x3b1   : > { %804 = vadd.xlane.f32.xlu2 %v803_v4  ;;  %798 = vadd.xlane.f32.xlu1 %v797_v5  ;;  %v787_v21 = vmul.f32 1.442695, %v773_v19 }
 0x3b5   : > { %4244 = vrot.lane.b32.xlu0 %v4243_v6, %s4370_s25 }
 0x3b6   : > { %v766_v7 = vpop.xlane.xlu2 %765 }
 0x3b7   : > { %v774_v8 = vsub.f32 %v741_v48, %v766_v7 }
 0x3b9   : > { %v789_v9 = vmul.f32 1.442695, %v774_v8 }
 0x3bb   : > { %4281 = vpow2.f32 %v789_v9 }
 0x3bc   : > { %4283 = vpow2.f32 %v785_v14 }
 0x3bd   : > { %4285 = vpow2.f32 %v781_v15 }
 0x3be   : > { %4287 = vpow2.f32 %v787_v21 }
 0x3c1   : > { %v4615_v10 = vpop.eup %4281 }
 0x3c2   : > { %v812_v11 = vsel %vm555_vm5, %v4615_v10, 0.0  ;;  %v4284_v16 = vpop.eup %4283 }
 0x3c3   : > { %813 = vadd.xlane.f32.xlu1 %v812_v11  ;;  %v806_v18 = vsel %vm555_vm5, %v4284_v16, 0.0  ;;  %v4286_v20 = vpop.eup %4285  ;;  %v4036_v11 = vld [vmem:[%s4458_s27] sm:$0xff] }
 0x3c4   : > { %v800_v38 = vsel %vm555_vm5, %v4286_v20, 0.0  ;;  %v4288_v39 = vpop.eup %4287  ;;  %v4255_v29 = vpop.permute.xlu1 %4254 }
 0x3c5   : > { %v809_v22 = vsel %vm555_vm5, %v4288_v39, 0.0  ;;  %v4256_v47 = vunpack.i.l.bf16 %v4255_v29  ;;  %v4257_v49 = vunpack.i.h.bf16 %v4255_v29 }
 0x3c9   : > { %4249 = vrot.lane.b32.xlu2 %v4248_v12, %s4370_s25 }
 0x3df   : > { %807 = vadd.xlane.f32.xlu0 %v806_v18 }
 0x3e7   : > { %801 = vadd.xlane.f32.xlu0 %v800_v38 }
 0x3f2   : > { %810 = vadd.xlane.f32.xlu2 %v809_v22 }
 0x414   : > { %v793_v24 = vpop.xlane.xlu0 %792 }
 0x415   : > { %4289 = vrcp.f32 %v793_v24  ;;  %v974_v24 = vperm.slane %v4524_v28, 1 }
 0x41b   : > { %v4290_v32 = vpop.eup %4289 }
 0x41c   : > { %v796_v23 = vpop.xlane.xlu2 %795  ;;  %v823_v40 = vmul.f32 %v4290_v32, %v4596_v57 }
 0x41d   : > { %4291 = vrcp.f32 %v796_v23 }
 0x423   : > { %v4292_v45 = vpop.eup %4291 }
 0x424   : > { %v805_v27 = vpop.xlane.xlu2 %804  ;;  %v799_v43 = vpop.xlane.xlu1 %798  ;;  %v824_v48 = vmul.f32 %v4292_v45, %v4600_v62 }
 0x425   : > { %4293 = vrcp.f32 %v805_v27 }
 0x426   : > { %4295 = vrcp.f32 %v799_v43  ;;  %v4375_v43 = vmov 32.0  }
 0x427   : > { %v4245_v30 = vpop.permute.xlu0 %4244 }
 0x428   : > { %v4246_v35 = vunpack.i.l.bf16 %v4245_v30  ;;  %v4247_v36 = vunpack.i.h.bf16 %v4245_v30 }
 0x42a   : > { %869 = vmatpush.msra.mxu3 %v4246_v35 }
 0x42b   : > { %v4294_v46 = vpop.eup %4293 }
 0x42c   : > { %870 = vmatpush.msra.mxu3 %v4247_v36  ;;  %v4250_v41 = vpop.permute.xlu2 %4249  ;;  %v827_v50 = vmul.f32 %v4294_v46, %v4604_v1  ;;  %v4296_v51 = vpop.eup %4295 }
 0x42d   : > { %3350 = vmatmul.msk.f32.vlgmr.msra.gmra.mxu3 %vm555_vm5, %v823_v40  ;;  %v4251_v42 = vunpack.i.l.bf16 %v4250_v41  ;;  %v4252_v44 = vunpack.i.h.bf16 %v4250_v41  ;;  %v825_v52 = vmul.f32 %v4296_v51, %v4606_v3 }
 0x42f   : > { %920 = vmatpush.msrb.mxu0 %v4251_v42  ;;  %v4652_v42 = vperm.slane %v4524_v28, 2 }
 0x431   : > { %921 = vmatpush.msrb.mxu0 %v4252_v44 }
 0x433   : > { %922 = vmatpush.msrb.mxu0 %v4256_v47 }
 0x435   : > { %3351 = vmatmul.msk.f32.gmra.mxu3 %vm555_vm5, %v824_v48  ;;  %923 = vmatpush.msrb.mxu0 %v4257_v49 }
 0x436   : > { %3354 = vmatmul.msk.f32.vlgmr.msrb.gmra.mxu0 %vm555_vm5, %v827_v50  ;;  %v814_v60 = vpop.xlane.xlu1 %813 }
 0x43d   : > { %3352 = vmatmul.msk.f32.gmra.mxu3 %vm555_vm5, %v825_v52 }
 0x452   : > { %v808_v53 = vpop.xlane.xlu0 %807 }
 0x453   : > { %4297 = vrcp.f32 %v808_v53 }
 0x459   : > { %v4298_v54 = vpop.eup %4297 }
 0x45a   : > { %v802_v55 = vpop.xlane.xlu0 %801  ;;  %v828_v56 = vmul.f32 %v4298_v54, %v4284_v16 }
 0x45b   : > { %4299 = vrcp.f32 %v802_v55 }
 0x45c   : > { %3355 = vmatmul.msk.f32.gmra.mxu0 %vm555_vm5, %v828_v56 }
 0x461   : > { %v4300_v57 = vpop.eup %4299 }
 0x462   : > { %v826_v58 = vmul.f32 %v4300_v57, %v4286_v20  ;;  %v4054_v57 = vld [vmem:[%s4463_s30 + $0x84] sm:$0xf] }
 0x464   : > { %3353 = vmatmul.msk.f32.gmra.mxu3 %vm555_vm5, %v826_v58  ;;  %v3435_v58 = vld [vmem:[%s4463_s30 + $0xc0] sm:$0xf0] }
 0x465   : > { %v811_v59 = vpop.xlane.xlu2 %810 }
 0x466   : > { %4301 = vrcp.f32 %v811_v59  ;;  %v3433_v59 = vld [vmem:[%s4463_s30 + $0x80] sm:$0xf] }
 0x467   : > { %4303 = vrcp.f32 %v814_v60  ;;  %v3438_v60 = vor.u32 %v4054_v57, %v3435_v58 }
 0x468   : > { %4305 = vrcp.f32 %v4375_v43 }
 0x469   : > { %1284 = vmatpush.bf16.msrb.mxu2 %v3438_v60 }
 0x46c   : > { %v4302_v61 = vpop.eup %4301 }
 0x46d   : > { %v829_v33 = vmul.f32 %v4302_v61, %v4288_v39  ;;  %v4304_v37 = vpop.eup %4303  ;;  %v4062_v61 = vld [vmem:[%s4463_s30 + $0xbc] sm:$0xf0] }
 0x46e   : > { %v830_v62 = vmul.f32 %v4304_v37, %v4615_v10  ;;  %v4037_v10 = vld [vmem:[%s4458_s27 + $0x8] sm:$0xff] }
 0x46f   : > { %3356 = vmatmul.msk.f32.gmra.mxu0 %vm555_vm5, %v829_v33  ;;  %996 = vmatpush.bf16.msrb.mxu3 %v4037_v10  ;;  %v3434_v33 = vor.u32 %v4062_v61, %v3433_v59  ;;  %v3441_v37 = vld [vmem:[%s4463_s30 + $0x88] sm:$0xf]  ;;  %v4046_v10 = vld [vmem:[%s4463_s30 + $0x3c] sm:$0xf0] }
 0x471   : > { %1270 = vmatpush.bf16.msrb.mxu1 %v3434_v33 }
 0x473   : > { %997 = vmatpush.bf16.msrb.mxu3 %v4036_v11  ;;  %v3377_v11 = vld [vmem:[%s4463_s30 + $0x8] sm:$0xf] }
 0x477   : > { %3357 = vmatmul.msk.f32.gmra.mxu0 %vm555_vm5, %v830_v62  ;;  %v4063_v62 = vld [vmem:[%s4463_s30 + $0xc4] sm:$0xf0] }
 0x4b0   : > { %v872_v63 = vpop.f32.mrf.mxu3 }
 0x4b3   : > { %v925_v0 = vpop.f32.mrf.mxu0 }
 0x4b8   : > { %v875_v1 = vpop.f32.mrf.mxu3 }
 0x4c0   : > { %v878_v4 = vpop.f32.mrf.mxu3 }
 0x4d9   : > { %v928_v2 = vpop.f32.mrf.mxu0 }
 0x4da   : > { %v4258_v3 = vpack.i.bf16 %v928_v2, %v875_v1  ;;  %v3443_v1 = vld [vmem:[%s4463_s30 + $0xc8] sm:$0xf0] }
 0x4dc   : > { %4259 = vrot.lane.b32.xlu0 %v4258_v3, %s4372_s26 }
 0x4e7   : > { %v881_v7 = vpop.f32.mrf.mxu3 }
 0x4ec   : > { %v931_v5 = vpop.f32.mrf.mxu0 }
 0x4ed   : > { %v4263_v6 = vpack.i.bf16 %v931_v5, %v878_v4  ;;  %v4038_v5 = vld [vmem:[%s4463_s30 + $0x4] sm:$0xf] }
 0x4ef   : > { %4264 = vrot.lane.b32.xlu1 %v4263_v6, %s4373_s21  ;;  %v3371_v6 = vld [vmem:[%s4463_s30 + $0x40] sm:$0xf0] }
 0x4f4   : > { %v934_v8 = vpop.f32.mrf.mxu0 }
 0x4f5   : > { %v4268_v9 = vpack.i.bf16 %v934_v8, %v881_v7  ;;  %v3369_v7 = vld [vmem:[%s4463_s30] sm:$0xf] }
 0x4f7   : > { %4269 = vrot.lane.b32.xlu2 %v4268_v9, %s4374_s28  ;;  %v3374_v9 = vor.u32 %v4038_v5, %v3371_v6  ;;  %v3465_v5 = vld [vmem:[%s4463_s30 + $0xa0] sm:$0xf] }
 0x4f8   : > { %v4066_v6 = vld [vmem:[%s4463_s30 + $0xdc] sm:$0xf0] }
 0x4f9   : > { %1285 = vmatpush.bf16.msrb.mxu2 %v3374_v9  ;;  %v3473_v9 = vld [vmem:[%s4463_s30 + $0xa8] sm:$0xf] }
 0x54e   : > { %v4260_v12 = vpop.permute.xlu0 %4259 }
 0x54f   : > { %v4262_v13 = vunpack.i.h.bf16 %v4260_v12  ;;  %v4261_v14 = vunpack.i.l.bf16 %v4260_v12  ;;  %v3370_v12 = vor.u32 %v4046_v10, %v3369_v7  ;;  %v4058_v7 = vld [vmem:[%s4463_s30 + $0xa4] sm:$0xf] }
 0x551   : > { %v4270_v31 = vpop.permute.xlu2 %4269  ;;  %v962_v17 = vsel %vm644_vm6, %v925_v0, %v4262_v13  ;;  %v961_v18 = vsel %vm644_vm6, %v872_v63, %v4261_v14  ;;  %v4055_v63 = vld [vmem:[%s4463_s30 + $0x8c] sm:$0xf]  ;;  %v3442_v0 = vor.u32 %v4063_v62, %v3441_v37  ;;  %v4047_v13 = vld [vmem:[%s4463_s30 + $0x44] sm:$0xf0]  ;;  %1271 = vmatpush.bf16.msrb.mxu1 %v3370_v12 }
 0x552   : > { %v4272_v19 = vunpack.i.h.bf16 %v4270_v31  ;;  %v4271_v20 = vunpack.i.l.bf16 %v4270_v31  ;;  %v3446_v3 = vor.u32 %v4055_v63, %v3443_v1  ;;  %v4039_v14 = vld [vmem:[%s4463_s30 + $0xc] sm:$0xf] }
 0x553   : > { %1298 = vmatpush.bf16.msra.mxu0 %v3442_v0  ;;  %v3379_v31 = vld [vmem:[%s4463_s30 + $0x48] sm:$0xf0] }
 0x554   : > { %1312 = vmatpush.bf16.msra.mxu3 %v3446_v3  ;;  %v3475_v12 = vld [vmem:[%s4463_s30 + $0xe8] sm:$0xf0] }
 0x561   : > { %v4265_v34 = vpop.permute.xlu1 %4264 }
 0x562   : > { %v4267_v15 = vunpack.i.h.bf16 %v4265_v34  ;;  %v4266_v16 = vunpack.i.l.bf16 %v4265_v34  ;;  %v3378_v34 = vor.u32 %v4047_v13, %v3377_v11 }
 0x564   : > { %v965_v21 = vsel %vm963_vm3, %v962_v17, %v4267_v15  ;;  %v964_v38 = vsel %vm963_vm3, %v961_v18, %v4266_v16  ;;  %v3382_v15 = vor.u32 %v4039_v14, %v3379_v31  ;;  %1299 = vmatpush.bf16.msra.mxu0 %v3378_v34  ;;  %v3449_v17 = vld [vmem:[%s4463_s30 + $0x90] sm:$0xf]  ;;  %v3466_v14 = vor.u32 %v4066_v6, %v3465_v5  ;;  %v3401_v34 = vld [vmem:[%s4463_s30 + $0x20] sm:$0xf]  ;;  %v4099_v5 = vld [vmem:[%s4468_s15 + $0xe8] sm:$0xff] }
 0x565   : > { %v967_v39 = vsel %vm966_vm4, %v964_v38, %v4271_v20  ;;  %v968_v22 = vsel %vm966_vm4, %v965_v21, %v4272_v19  ;;  %v4064_v18 = vld [vmem:[%s4463_s30 + $0xcc] sm:$0xf0]  ;;  %v4056_v19 = vld [vmem:[%s4463_s30 + $0x94] sm:$0xf]  ;;  %v4074_v6 = vld [vmem:[%s4468_s15 + $0x20] sm:$0xff] }
 0x566   : > { %v969_v23 = vpack.c.bf16 %v968_v22, %v967_v39  ;;  %1313 = vmatpush.bf16.msra.mxu3 %v3382_v15  ;;  %v3450_v21 = vor.u32 %v4064_v18, %v3449_v17  ;;  %v3451_v38 = vld [vmem:[%s4463_s30 + $0xd0] sm:$0xf0]  ;;  %v3457_v39 = vld [vmem:[%s4463_s30 + $0x98] sm:$0xf]  ;;  %v4050_v15 = vld [vmem:[%s4463_s30 + $0x5c] sm:$0xf0] }
 0x567   : > { %v4065_v22 = vld [vmem:[%s4463_s30 + $0xd4] sm:$0xf0]  ;;  %v4042_v18 = vld [vmem:[%s4463_s30 + $0x24] sm:$0xf] }
 0x568   : > { %3366 = vmatmul.msk.bf16.vlgmr.msrb.gmra.mxu3 %vm555_vm5, %v969_v23  ;;  %v3454_v23 = vor.u32 %v4056_v19, %v3451_v38  ;;  %1326 = vmatpush.bf16.msra.mxu1 %v3450_v21  ;;  %v3403_v19 = vld [vmem:[%s4463_s30 + $0x60] sm:$0xf0]  ;;  %v4051_v21 = vld [vmem:[%s4463_s30 + $0x64] sm:$0xf0]  ;;  %v4043_v38 = vld [vmem:[%s4463_s30 + $0x2c] sm:$0xf] }
 0x56a   : > { %1340 = vmatpush.bf16.msra.mxu2 %v3454_v23  ;;  %v3406_v23 = vor.u32 %v4042_v18, %v3403_v19  ;;  %v4087_v18 = vld [vmem:[%s4468_s15 + $0x88] sm:$0xff] }
 0x56b   : > { %v4095_v19 = vld [vmem:[%s4468_s15 + $0xc8] sm:$0xff] }
 0x5eb   : > { %v999_v27 = vpop.f32.mrf.mxu3 }
 0x5ec   : > { %v1000_v29 = vadd.f32 %v999_v27, %v974_v24  ;;  %v4057_v27 = vld [vmem:[%s4463_s30 + $0x9c] sm:$0xf] }
 0x5ee   : > { %v1004_v30 = vadd.f32 %v1000_v29, %v4516_v25  ;;  %v4306_v25 = vpop.eup %4305  ;;  %v3459_v29 = vld [vmem:[%s4463_s30 + $0xd8] sm:$0xf0] }
 0x5ef   : > { %v1013_v44 = vmul.f32 32.0, %v4306_v25  ;;  %vm1017_vm6 = vweird.f32 %v4306_v25 }
 0x5f0   : > { %v1006_v32 = vsel %vm555_vm5, %v1004_v30, 0.0 }
 0x5f1   : > { %1007 = vadd.xlane.f32.xlu0 %v1006_v32  ;;  %v1014_v45 = vsub.f32 1.0, %v1013_v44  ;;  %v3387_v44 = vld [vmem:[%s4463_s30 + $0x50] sm:$0xf0] }
 0x5f3   : > { %v1001_v35 = vpop.f32.mrf.mxu3  ;;  %v1015_v46 = vmul.f32 %v4306_v25, %v1014_v45  ;;  %v3393_v45 = vld [vmem:[%s4463_s30 + $0x18] sm:$0xf] }
 0x5f4   : > { %v1002_v36 = vadd.f32 %v1001_v35, %v974_v24 }
 0x5f5   : > { %v1016_v47 = vadd.f32 %v4306_v25, %v1015_v46  ;;  %v4049_v46 = vld [vmem:[%s4463_s30 + $0x54] sm:$0xf0] }
 0x5f6   : > { %v1005_v40 = vadd.f32 %v1002_v36, %v4518_v26  ;;  %v3462_v36 = vor.u32 %v4057_v27, %v3459_v29  ;;  %v3481_v29 = vld [vmem:[%s4463_s30 + $0xb0] sm:$0xf] }
 0x5f7   : > { %v4656_v26 = vsel %vm1017_vm6, %v4306_v25, %v1016_v47 }
 0x5f8   : > { %v1009_v41 = vsel %vm555_vm5, %v1005_v40, 0.0  ;;  %1368 = vmatpush.bf16.msrb.mxu3 %v3462_v36  ;;  %v3489_v36 = vld [vmem:[%s4463_s30 + $0xb8] sm:$0xf] }
 0x5f9   : > { %1010 = vadd.xlane.f32.xlu1 %v1009_v41  ;;  %v4040_v41 = vld [vmem:[%s4463_s30 + $0x14] sm:$0xf] }
 0x5fa   : > { %v3390_v47 = vor.u32 %v4040_v41, %v3387_v44  ;;  %v4061_v41 = vld [vmem:[%s4463_s30 + $0xbc] sm:$0xf] }
 0x5fc   : > { %1341 = vmatpush.bf16.msra.mxu2 %v3390_v47 }
 0x612   : > { %1063 = vrot.lane.b32.xlu1 %v974_v24, %s4370_s25 }
 0x61a   : > { %3122 = vrot.lane.b32.xlu1 %v4652_v42, %s4369_s6 }
 0x664   : > { %v1008_v48 = vpop.xlane.xlu0 %1007 }
 0x665   : > { %v1019_v28 = vmul.f32 %v4656_v26, %v1008_v48  ;;  %v3394_v48 = vor.u32 %v4049_v46, %v3393_v45  ;;  %v3417_v45 = vld [vmem:[%s4463_s30 + $0x30] sm:$0xf] }
 0x666   : > { %v4052_v46 = vld [vmem:[%s4463_s30 + $0x6c] sm:$0xf0] }
 0x667   : > { %v4659_v49 = vsub.f32 %v1004_v30, %v1019_v28  ;;  %v3385_v30 = vld [vmem:[%s4463_s30 + $0x10] sm:$0xf]  ;;  %v4041_v28 = vld [vmem:[%s4463_s30 + $0x1c] sm:$0xf] }
 0x669   : > { %v1023_v50 = vmul.f32 %v4659_v49, %v4659_v49 }
 0x66b   : > { %v1025_v51 = vsel %vm555_vm5, %v1023_v50, 0.0  ;;  %v3395_v50 = vld [vmem:[%s4463_s30 + $0x58] sm:$0xf0] }
 0x66c   : > { %v1011_v52 = vpop.xlane.xlu1 %1010  ;;  %1026 = vadd.xlane.f32.xlu2 %v1025_v51 }
 0x66d   : > { %v1020_v53 = vmul.f32 %v4656_v26, %v1011_v52  ;;  %v3398_v52 = vor.u32 %v4041_v28, %v3395_v50  ;;  %v4044_v28 = vld [vmem:[%s4463_s30 + $0x34] sm:$0xf] }
 0x66e   : > { %v3419_v50 = vld [vmem:[%s4463_s30 + $0x70] sm:$0xf0] }
 0x66f   : > { %v4665_v54 = vsub.f32 %v1005_v40, %v1020_v53  ;;  %v4048_v40 = vld [vmem:[%s4463_s30 + $0x4c] sm:$0xf0]  ;;  %1369 = vmatpush.bf16.msrb.mxu3 %v3398_v52  ;;  %v4053_v52 = vld [vmem:[%s4463_s30 + $0x74] sm:$0xf0] }
 0x670   : > { %v3386_v25 = vor.u32 %v4048_v40, %v3385_v30  ;;  %v4068_v30 = vld [vmem:[%s4463_s30 + $0xec] sm:$0xf0]  ;;  %v4069_v40 = vld [vmem:[%s4463_s30 + $0xf4] sm:$0xf0] }
 0x671   : > { %v1024_v55 = vmul.f32 %v4665_v54, %v4665_v54  ;;  %v3490_v47 = vor.u32 %v4069_v40, %v3489_v36  ;;  %v4107_v36 = vld [vmem:[%s4468_s15 + $0x128] sm:$0xff] }
 0x672   : > { %1327 = vmatpush.bf16.msra.mxu1 %v3386_v25  ;;  %v3482_v25 = vor.u32 %v4068_v30, %v3481_v29  ;;  %v4108_v29 = vld [vmem:[%s4468_s15 + $0x130] sm:$0xff]  ;;  %v4115_v40 = vld [vmem:[%s4468_s15 + $0x168] sm:$0xff] }
 0x673   : > { %v1028_v56 = vsel %vm555_vm5, %v1024_v55, 0.0  ;;  %v4116_v30 = vld [vmem:[%s4468_s15 + $0x170] sm:$0xff] }
 0x674   : > { %1029 = vadd.xlane.f32.xlu0 %v1028_v56 }
 0x684   : > { %v1064_v3 = vpop.permute.xlu1 %1063 }
 0x688   : > { %1058 = vrot.lane.b32.xlu0 %v974_v24, %s4369_s6  ;;  %v3458_v24 = vor.u32 %v4065_v22, %v3457_v39  ;;  %v3411_v39 = vld [vmem:[%s4463_s30 + $0x68] sm:$0xf0]  ;;  %v3402_v22 = vor.u32 %v4050_v15, %v3401_v34  ;;  %v4080_v34 = vld [vmem:[%s4468_s15 + $0x50] sm:$0xff] }
 0x689   : > { %v3414_v27 = vor.u32 %v4043_v38, %v3411_v39  ;;  %v4088_v15 = vld [vmem:[%s4468_s15 + $0x90] sm:$0xff]  ;;  %v4086_v38 = vld [vmem:[%s4468_s15 + $0x80] sm:$0xff] }
 0x68a   : > { %1354 = vmatpush.bf16.msrb.mxu0 %v3458_v24  ;;  %v4094_v39 = vld [vmem:[%s4468_s15 + $0xc0] sm:$0xff] }
 0x68e   : > { %1355 = vmatpush.bf16.msrb.mxu0 %v3394_v48 }
 0x6df   : > { %v1027_v2 = vpop.xlane.xlu2 %1026 }
 0x6e0   : > { %v1031_v4 = vmul.f32 %v1027_v2, %v4656_v26 }
 0x6e2   : > { %v4683_v8 = vadd.f32 1e-05, %v1031_v4 }
 0x6e4   : > { %4307 = vrsqrt.f32 %v4683_v8  ;;  %vm1041_vm8 = vweird.f32 %v4683_v8 }
 0x6e7   : > { %v1030_v16 = vpop.xlane.xlu0 %1029 }
 0x6e8   : > { %v1032_v20 = vmul.f32 %v1030_v16, %v4656_v26 }
 0x6ea   : > { %v4308_v32 = vpop.eup %4307  ;;  %v1034_v35 = vadd.f32 1e-05, %v1032_v20  ;;  %v3409_v20 = vld [vmem:[%s4463_s30 + $0x28] sm:$0xf] }
 0x6eb   : > { %v1036_v43 = vmul.f32 %v4308_v32, %v4683_v8  ;;  %vm1042_vm7 = vweird.f32 %v4308_v32  ;;  %v3467_v8 = vld [vmem:[%s4463_s30 + $0xe0] sm:$0xf0]  ;;  %v3410_v24 = vor.u32 %v4051_v21, %v3409_v20 }
 0x6ec   : > { %4309 = vrsqrt.f32 %v1034_v35  ;;  %vm1043_vm9 = vmor %vm1041_vm8, %vm1042_vm7  ;;  %vm1051_vm11 = vweird.f32 %v1034_v35  ;;  %v3470_v31 = vor.u32 %v4058_v7, %v3467_v8  ;;  %v4082_v7 = vld [vmem:[%s4468_s15 + $0x60] sm:$0xff] }
 0x6ed   : > { %v1037_v51 = vmul.f32 %v4308_v32, %v1036_v43  ;;  %v3491_v43 = vld [vmem:[%s4463_s30 + $0xf8] sm:$0xf0]  ;;  %v4090_v8 = vld [vmem:[%s4468_s15 + $0xa0] sm:$0xff] }
 0x6ee   : > { %v3494_v48 = vor.u32 %v4061_v41, %v3491_v43  ;;  %v4070_v20 = vld [vmem:[%s4468_s15] sm:$0xff]  ;;  %v4123_v41 = vld [vmem:[%s4468_s15 + $0x1a8] sm:$0xff] }
 0x6ef   : > { %v1038_v53 = vmul.f32 0.5, %v1037_v51  ;;  %v3425_v51 = vld [vmem:[%s4463_s30 + $0x38] sm:$0xf]  ;;  %v4078_v21 = vld [vmem:[%s4468_s15 + $0x40] sm:$0xff]  ;;  %v4131_v43 = vld [vmem:[%s4468_s15 + $0x1e8] sm:$0xff] }
 0x6f1   : > { %v1039_v55 = vsub.f32 1.5, %v1038_v53  ;;  %v4045_v53 = vld [vmem:[%s4463_s30 + $0x3c] sm:$0xf] }
 0x6f2   : > { %v4310_v56 = vpop.eup %4309 }
 0x6f3   : > { %v1046_v57 = vmul.f32 %v4310_v56, %v1034_v35  ;;  %v1040_v59 = vmul.f32 %v4308_v32, %v1039_v55  ;;  %vm1052_vm10 = vweird.f32 %v4310_v56  ;;  %v3483_v35 = vld [vmem:[%s4463_s30 + $0xf0] sm:$0xf0]  ;;  %v3427_v55 = vld [vmem:[%s4463_s30 + $0x78] sm:$0xf0] }
 0x6f4   : > { %vm1053_vm12 = vmor %vm1051_vm11, %vm1052_vm10 }
 0x6f5   : > { %v1047_v58 = vmul.f32 %v4310_v56, %v1046_v57  ;;  %v1044_v33 = vsel %vm1043_vm9, %v4308_v32, %v1040_v59  ;;  %v4060_v32 = vld [vmem:[%s4463_s30 + $0xb4] sm:$0xf]  ;;  %v3422_v57 = vor.u32 %v4044_v28, %v3419_v50  ;;  %v3430_v59 = vor.u32 %v4045_v53, %v3427_v55  ;;  %v4121_v28 = vld [vmem:[%s4468_s15 + $0x198] sm:$0xff] }
 0x6f6   : > { %v1055_v63 = vmul.f32 %v1044_v33, %v4659_v49  ;;  %v4067_v49 = vld [vmem:[%s4463_s30 + $0xe4] sm:$0xf0]  ;;  %v3486_v44 = vor.u32 %v4060_v32, %v3483_v35  ;;  %v4093_v33 = vld [vmem:[%s4468_s15 + $0xb8] sm:$0xff]  ;;  %v4124_v32 = vld [vmem:[%s4468_s15 + $0x1b0] sm:$0xff] }
 0x6f7   : > { %v1048_v60 = vmul.f32 0.5, %v1047_v58  ;;  %v3474_v16 = vor.u32 %v4067_v49, %v3473_v9  ;;  %v3426_v58 = vor.u32 %v4053_v52, %v3425_v51  ;;  %v4098_v9 = vld [vmem:[%s4468_s15 + $0xe0] sm:$0xff]  ;;  %v4073_v49 = vld [vmem:[%s4468_s15 + $0x18] sm:$0xff]  ;;  %v4132_v35 = vld [vmem:[%s4468_s15 + $0x1f0] sm:$0xff] }
 0x6f8   : > { %v4129_v50 = vld [vmem:[%s4468_s15 + $0x1d8] sm:$0xff]  ;;  %v4104_v51 = vld [vmem:[%s4468_s15 + $0x110] sm:$0xff] }
 0x6f9   : > { %v1049_v61 = vsub.f32 1.5, %v1048_v60  ;;  %v4077_v60 = vld [vmem:[%s4468_s15 + $0x38] sm:$0xff]  ;;  %v4112_v52 = vld [vmem:[%s4468_s15 + $0x150] sm:$0xff] }
 0x6fa   : > { %v1059_v62 = vpop.permute.xlu0 %1058  ;;  %v4120_v53 = vld [vmem:[%s4468_s15 + $0x190] sm:$0xff] }
 0x6fb   : > { %v1050_v37 = vmul.f32 %v4310_v56, %v1049_v61  ;;  %v1061_v2 = vmul.f32 %v1059_v62, %v1055_v63  ;;  %v4085_v61 = vld [vmem:[%s4468_s15 + $0x78] sm:$0xff]  ;;  %v4084_v63 = vld [vmem:[%s4468_s15 + $0x70] sm:$0xff] }
 0x6fc   : > { %v4128_v55 = vld [vmem:[%s4468_s15 + $0x1d0] sm:$0xff] }
 0x6fd   : > { %v1054_v0 = vsel %vm1053_vm12, %v4310_v56, %v1050_v37  ;;  %v4717_v10 = vadd.f32 %v1064_v3, %v1061_v2  ;;  %v3418_v56 = vor.u32 %v4052_v46, %v3417_v45  ;;  %v4101_v37 = vld [vmem:[%s4468_s15 + $0xf8] sm:$0xff]  ;;  %v4075_v2 = vld [vmem:[%s4468_s15 + $0x28] sm:$0xff]  ;;  %v4122_v45 = vld [vmem:[%s4468_s15 + $0x1a0] sm:$0xff] }
 0x6fe   : > { %v1056_v1 = vmul.f32 %v1054_v0, %v4665_v54  ;;  %v4059_v54 = vld [vmem:[%s4463_s30 + $0xac] sm:$0xf]  ;;  %v4092_v0 = vld [vmem:[%s4468_s15 + $0xb0] sm:$0xff]  ;;  %v4130_v46 = vld [vmem:[%s4468_s15 + $0x1e0] sm:$0xff] }
 0x6ff   : > { %v3478_v17 = vor.u32 %v4059_v54, %v3475_v12  ;;  %v4081_v54 = vld [vmem:[%s4468_s15 + $0x58] sm:$0xff] }
 0x700   : > { %v1062_v4 = vmul.f32 %v1059_v62, %v1056_v1  ;;  %v4076_v62 = vld [vmem:[%s4468_s15 + $0x30] sm:$0xff]  ;;  %v4089_v12 = vld [vmem:[%s4468_s15 + $0x98] sm:$0xff] }
 0x701   : > { %v4100_v1 = vld [vmem:[%s4468_s15 + $0xf0] sm:$0xff] }
 0x702   : > { %v4719_v11 = vadd.f32 %v1064_v3, %v1062_v4  ;;  %v4083_v3 = vld [vmem:[%s4468_s15 + $0x68] sm:$0xff] }
 0x703   : > { %v4091_v4 = vld [vmem:[%s4468_s15 + $0xa8] sm:$0xff] }
 0x704   : > { %v4726_v13 = vpack.c.bf16 %v4719_v11, %v4717_v10 }
 0x706   : > { %3495 = vmatmul.msk.bf16.vlgmr.msrb.gmra.mxu1 %vm555_vm5, %v4726_v13  ;;  %3496 = vmatmul.msk.bf16.vlgmr.msrb.gmra.mxu2 %vm555_vm5, %v4726_v13 }
 0x707   : > { %3497 = vmatmul.msk.bf16.vlgmr.msra.gmra.mxu0 %vm555_vm5, %v4726_v13  ;;  %3498 = vmatmul.msk.bf16.vlgmr.msra.gmra.mxu3 %vm555_vm5, %v4726_v13 }
 0x708   : > { %1382 = vmatpush.bf16.msrb.mxu1 %v3466_v14  ;;  %1396 = vmatpush.bf16.msrb.mxu2 %v3470_v31  ;;  %v4097_v14 = vld [vmem:[%s4468_s15 + $0xd8] sm:$0xff]  ;;  %v4072_v31 = vld [vmem:[%s4468_s15 + $0x10] sm:$0xff] }
 0x709   : > { %1410 = vmatpush.bf16.msra.mxu0 %v3474_v16  ;;  %1424 = vmatpush.bf16.msra.mxu3 %v3478_v17  ;;  %v4096_v16 = vld [vmem:[%s4468_s15 + $0xd0] sm:$0xff]  ;;  %v4071_v17 = vld [vmem:[%s4468_s15 + $0x8] sm:$0xff] }
 0x70c   : > { %1383 = vmatpush.bf16.msrb.mxu1 %v3402_v22  ;;  %1397 = vmatpush.bf16.msrb.mxu2 %v3406_v23  ;;  %v4109_v22 = vld [vmem:[%s4468_s15 + $0x138] sm:$0xff] }
 0x70d   : > { %1411 = vmatpush.bf16.msra.mxu0 %v3410_v24  ;;  %1425 = vmatpush.bf16.msra.mxu3 %v3414_v27  ;;  %v4117_v23 = vld [vmem:[%s4468_s15 + $0x178] sm:$0xff] }
 0x70e   : > { %v4125_v24 = vld [vmem:[%s4468_s15 + $0x1b8] sm:$0xff] }
 0x70f   : > { %v4133_v27 = vld [vmem:[%s4468_s15 + $0x1f8] sm:$0xff] }
 0x716   : > { %3499 = vmatmul.msk.bf16.vlgmr.msra.gmra.mxu1 %vm555_vm5, %v4726_v13  ;;  %3500 = vmatmul.msk.bf16.vlgmr.msra.gmra.mxu2 %vm555_vm5, %v4726_v13 }
 0x717   : > { %3501 = vmatmul.msk.bf16.vlgmr.msrb.gmra.mxu0 %vm555_vm5, %v4726_v13  ;;  %3502 = vmatmul.msk.bf16.vlgmr.msrb.gmra.mxu3 %vm555_vm5, %v4726_v13 }
 0x718   : > { %1438 = vmatpush.bf16.msra.mxu1 %v3482_v25  ;;  %1452 = vmatpush.bf16.msra.mxu2 %v3486_v44  ;;  %v4106_v25 = vld [vmem:[%s4468_s15 + $0x120] sm:$0xff] }
 0x719   : > { %1466 = vmatpush.bf16.msrb.mxu0 %v3490_v47  ;;  %1480 = vmatpush.bf16.msrb.mxu3 %v3494_v48  ;;  %v4114_v44 = vld [vmem:[%s4468_s15 + $0x160] sm:$0xff]  ;;  %v4105_v47 = vld [vmem:[%s4468_s15 + $0x118] sm:$0xff] }
 0x71a   : > { %v4113_v48 = vld [vmem:[%s4468_s15 + $0x158] sm:$0xff] }
 0x71c   : > { %1439 = vmatpush.bf16.msra.mxu1 %v3418_v56  ;;  %1453 = vmatpush.bf16.msra.mxu2 %v3422_v57  ;;  %v535_v56 = vld [vmem:[%s4473_s23] sm:$0xff]  ;;  %v4103_v57 = vld [vmem:[%s4468_s15 + $0x108] sm:$0xff] }
 0x71d   : > { %1467 = vmatpush.bf16.msrb.mxu0 %v3426_v58  ;;  %1481 = vmatpush.bf16.msrb.mxu3 %v3430_v59  ;;  %v4111_v58 = vld [vmem:[%s4468_s15 + $0x148] sm:$0xff] }
 0x71e   : > { %v4119_v59 = vld [vmem:[%s4468_s15 + $0x188] sm:$0xff] }
 0x726   : > { %3503 = vmatmul.msk.bf16.vlgmr.msrb.gmra.mxu1 %vm555_vm5, %v4726_v13  ;;  %3504 = vmatmul.msk.bf16.vlgmr.msrb.gmra.mxu2 %vm555_vm5, %v4726_v13 }
 0x727   : > { %3505 = vmatmul.msk.bf16.vlgmr.msra.gmra.mxu0 %vm555_vm5, %v4726_v13  ;;  %3506 = vmatmul.msk.bf16.vlgmr.msra.gmra.mxu3 %vm555_vm5, %v4726_v13 }
 0x728   : > { %2851 = vmatpush.bf16.msrb.mxu1 %v4077_v60  ;;  %2865 = vmatpush.bf16.msrb.mxu2 %v4085_v61  ;;  %v4127_v60 = vld [vmem:[%s4468_s15 + $0x1c8] sm:$0xff]  ;;  %v1506_v61 = vperm.slane %v535_v56, 0 }
 0x729   : > { %2879 = vmatpush.bf16.msra.mxu0 %v4093_v33  ;;  %2893 = vmatpush.bf16.msra.mxu3 %v4101_v37  ;;  %v1507_v33 = vperm.slane %v535_v56, 1  ;;  %v1508_v37 = vperm.slane %v535_v56, 2 }
 0x72c   : > { %2852 = vmatpush.bf16.msrb.mxu1 %v4076_v62  ;;  %2866 = vmatpush.bf16.msrb.mxu2 %v4084_v63  ;;  %v1509_v62 = vperm.slane %v535_v56, 3  ;;  %v4102_v63 = vld [vmem:[%s4468_s15 + $0x100] sm:$0xff] }
 0x72d   : > { %2880 = vmatpush.bf16.msra.mxu0 %v4092_v0  ;;  %2894 = vmatpush.bf16.msra.mxu3 %v4100_v1  ;;  %v4110_v0 = vld [vmem:[%s4468_s15 + $0x140] sm:$0xff] }
 0x72e   : > { %v4118_v1 = vld [vmem:[%s4468_s15 + $0x180] sm:$0xff] }
 0x730   : > { %2853 = vmatpush.bf16.msrb.mxu1 %v4075_v2  ;;  %2867 = vmatpush.bf16.msrb.mxu2 %v4083_v3  ;;  %v4126_v2 = vld [vmem:[%s4468_s15 + $0x1c0] sm:$0xff]  ;;  %v1538_v3 = vpack.c.bf16 %v1507_v33, %v1506_v61 }
 0x731   : > { %2881 = vmatpush.bf16.msra.mxu0 %v4091_v4  ;;  %2895 = vmatpush.bf16.msra.mxu3 %v4099_v5  ;;  %v1539_v4 = vpack.c.bf16 %v1509_v62, %v1508_v37 }
 0x732   : > { %v1554_v5 = vunpack.c.l.b16 %v1538_v3 }
 0x734   : > { %2854 = vmatpush.bf16.msrb.mxu1 %v4074_v6  ;;  %2868 = vmatpush.bf16.msrb.mxu2 %v4082_v7  ;;  %v1555_v6 = vunpack.c.h.b16 %v1538_v3  ;;  %v1556_v7 = vunpack.c.l.b16 %v1539_v4 }
 0x735   : > { %2882 = vmatpush.bf16.msra.mxu0 %v4090_v8  ;;  %2896 = vmatpush.bf16.msra.mxu3 %v4098_v9  ;;  %v1557_v8 = vunpack.c.h.b16 %v1539_v4  ;;  %v1510_v9 = vperm.slane %v535_v56, 4 }
 0x736   : > { %3507 = vmatmul.msk.bf16.vlgmr.msra.gmra.mxu1 %vm555_vm5, %v4726_v13  ;;  %3508 = vmatmul.msk.bf16.vlgmr.msra.gmra.mxu2 %vm555_vm5, %v4726_v13 }
 0x737   : > { %3509 = vmatmul.msk.bf16.vlgmr.msrb.gmra.mxu0 %vm555_vm5, %v4726_v13  ;;  %3510 = vmatmul.msk.bf16.vlgmr.msrb.gmra.mxu3 %vm555_vm5, %v4726_v13  ;;  %v4079_v13 = vld [vmem:[%s4468_s15 + $0x48] sm:$0xff] }
 0x738   : > { %2855 = vmatpush.bf16.msrb.mxu1 %v4073_v49  ;;  %2869 = vmatpush.bf16.msrb.mxu2 %v4081_v54  ;;  %v1511_v49 = vperm.slane %v535_v56, 5 }
 0x739   : > { %2883 = vmatpush.bf16.msra.mxu0 %v4089_v12  ;;  %2897 = vmatpush.bf16.msra.mxu3 %v4097_v14  ;;  %v1512_v12 = vperm.slane %v535_v56, 6  ;;  %v1513_v14 = vperm.slane %v535_v56, 7 }
 0x73c   : > { %2856 = vmatpush.bf16.msrb.mxu1 %v4072_v31  ;;  %2870 = vmatpush.bf16.msrb.mxu2 %v4080_v34  ;;  %v1570_v34 = vpack.c.b16 %v1554_v5, %v1554_v5 }
 0x73d   : > { %2884 = vmatpush.bf16.msra.mxu0 %v4088_v15  ;;  %2898 = vmatpush.bf16.msra.mxu3 %v4096_v16  ;;  %v1571_v15 = vpack.c.b16 %v1555_v6, %v1555_v6  ;;  %v1572_v16 = vpack.c.b16 %v1556_v7, %v1556_v7 }
 0x740   : > { %2857 = vmatpush.bf16.msrb.mxu1 %v4071_v17  ;;  %2871 = vmatpush.bf16.msrb.mxu2 %v4079_v13  ;;  %v1573_v17 = vpack.c.b16 %v1557_v8, %v1557_v8  ;;  %v1540_v13 = vpack.c.bf16 %v1511_v49, %v1510_v9 }
 0x741   : > { %2885 = vmatpush.bf16.msra.mxu0 %v4087_v18  ;;  %2899 = vmatpush.bf16.msra.mxu3 %v4095_v19  ;;  %v1541_v18 = vpack.c.bf16 %v1513_v14, %v1512_v12  ;;  %v1587_v19 = vpack.i.b16 %v1570_v34, %v1570_v34 }
 0x744   : > { %2858 = vmatpush.bf16.msrb.mxu1 %v4070_v20  ;;  %2872 = vmatpush.bf16.msrb.mxu2 %v4078_v21  ;;  %v1591_v20 = vpack.i.b16 %v1571_v15, %v1571_v15 }
 0x745   : > { %2886 = vmatpush.bf16.msra.mxu0 %v4086_v38  ;;  %2900 = vmatpush.bf16.msra.mxu3 %v4094_v39  ;;  %v1595_v38 = vpack.i.b16 %v1572_v16, %v1572_v16  ;;  %v1599_v39 = vpack.i.b16 %v1573_v17, %v1573_v17 }
 0x748   : > { %2907 = vmatpush.bf16.msra.mxu1 %v4109_v22  ;;  %2921 = vmatpush.bf16.msra.mxu2 %v4117_v23  ;;  %v1558_v23 = vunpack.c.l.b16 %v1540_v13 }
 0x749   : > { %2935 = vmatpush.bf16.msrb.mxu0 %v4125_v24  ;;  %2949 = vmatpush.bf16.msrb.mxu3 %v4133_v27  ;;  %v1559_v24 = vunpack.c.h.b16 %v1540_v13 }
 0x74c   : > { %2908 = vmatpush.bf16.msra.mxu1 %v4108_v29  ;;  %2922 = vmatpush.bf16.msra.mxu2 %v4116_v30  ;;  %v1560_v29 = vunpack.c.l.b16 %v1541_v18 }
 0x74d   : > { %2936 = vmatpush.bf16.msrb.mxu0 %v4124_v32  ;;  %2950 = vmatpush.bf16.msrb.mxu3 %v4132_v35  ;;  %v1589_v32 = vperm.slane %v1587_v19, 0  ;;  %v1593_v35 = vperm.slane %v1591_v20, 0 }
 0x750   : > { %2909 = vmatpush.bf16.msra.mxu1 %v4107_v36  ;;  %2923 = vmatpush.bf16.msra.mxu2 %v4115_v40 }
 0x751   : > { %2937 = vmatpush.bf16.msrb.mxu0 %v4123_v41  ;;  %2951 = vmatpush.bf16.msrb.mxu3 %v4131_v43  ;;  %v1597_v41 = vperm.slane %v1595_v38, 0  ;;  %v1601_v43 = vperm.slane %v1599_v39, 0 }
 0x753   : > { %v1685_v56 = vunpack.c.l.bf16 %v1601_v43  ;;  %v4165_v43 = vld [vmem:[%s4468_s15 + $0x2f8] sm:$0xff] }
 0x754   : > { %2910 = vmatpush.bf16.msra.mxu1 %v4106_v25  ;;  %2924 = vmatpush.bf16.msra.mxu2 %v4114_v44  ;;  %v4849_v25 = vpack.c.b16 %v1558_v23, %v1558_v23  ;;  %v4851_v44 = vpack.c.b16 %v1559_v24, %v1559_v24 }
 0x755   : > { %2938 = vmatpush.bf16.msrb.mxu0 %v4122_v45  ;;  %2952 = vmatpush.bf16.msrb.mxu3 %v4130_v46  ;;  %v1561_v45 = vunpack.c.h.b16 %v1541_v18  ;;  %v4853_v46 = vpack.c.b16 %v1560_v29, %v1560_v29 }
 0x756   : > { %v1607_v61 = vpack.i.b16 %v4851_v44, %v4851_v44 }
 0x757   : > { %v1577_v33 = vpack.c.b16 %v1561_v45, %v1561_v45 }
 0x758   : > { %2911 = vmatpush.bf16.msra.mxu1 %v4105_v47  ;;  %2925 = vmatpush.bf16.msra.mxu2 %v4113_v48 }
 0x759   : > { %2939 = vmatpush.bf16.msrb.mxu0 %v4121_v28  ;;  %2953 = vmatpush.bf16.msrb.mxu3 %v4129_v50  ;;  %v1682_v28 = vunpack.c.l.bf16 %v1589_v32  ;;  %v1683_v50 = vunpack.c.l.bf16 %v1593_v35  ;;  %v1615_v16 = vpack.i.b16 %v1577_v33, %v1577_v33  ;;  %v4149_v32 = vld [vmem:[%s4468_s15 + $0x278] sm:$0xff] }
 0x75c   : > { %2912 = vmatpush.bf16.msra.mxu1 %v4104_v51  ;;  %2926 = vmatpush.bf16.msra.mxu2 %v4112_v52  ;;  %v4856_v51 = vld [vmem:[%s4473_s23 + $0x8] sm:$0xff] }
 0x75d   : > { %2940 = vmatpush.bf16.msrb.mxu0 %v4120_v53  ;;  %2954 = vmatpush.bf16.msrb.mxu3 %v4128_v55  ;;  %v1684_v55 = vunpack.c.l.bf16 %v1597_v41  ;;  %v1516_v14 = vperm.slane %v4856_v51, 2  ;;  %v4157_v41 = vld [vmem:[%s4468_s15 + $0x2b8] sm:$0xff] }
 0x760   : > { %2913 = vmatpush.bf16.msra.mxu1 %v4103_v57  ;;  %2927 = vmatpush.bf16.msra.mxu2 %v4111_v58 }
 0x761   : > { %2941 = vmatpush.bf16.msrb.mxu0 %v4119_v59  ;;  %2955 = vmatpush.bf16.msrb.mxu3 %v4127_v60  ;;  %v1603_v60 = vpack.i.b16 %v4849_v25, %v4849_v25 }
 0x764   : > { %2914 = vmatpush.bf16.msra.mxu1 %v4102_v63  ;;  %2928 = vmatpush.bf16.msra.mxu2 %v4110_v0  ;;  %v1611_v63 = vpack.i.b16 %v4853_v46, %v4853_v46  ;;  %v1514_v0 = vperm.slane %v4856_v51, 0  ;;  %v1605_v46 = vperm.slane %v1603_v60, 0  ;;  %v4164_v60 = vld [vmem:[%s4468_s15 + $0x2f0] sm:$0xff] }
 0x765   : > { %2942 = vmatpush.bf16.msrb.mxu0 %v4118_v1  ;;  %2956 = vmatpush.bf16.msrb.mxu3 %v4126_v2  ;;  %v1515_v1 = vperm.slane %v4856_v51, 1 }
 0x767   : > { %v1542_v17 = vpack.c.bf16 %v1515_v1, %v1514_v0 }
 0x769   : > { %v1562_v25 = vunpack.c.l.b16 %v1542_v17  ;;  %v1563_v44 = vunpack.c.h.b16 %v1542_v17 }
 0x76b   : > { %v4878_v33 = vpack.c.b16 %v1563_v44, %v1563_v44 }
 0x783   : > { %v1273_v54 = vpop.f32.mrf.mxu1 }
 0x784   : > { %v1301_v31 = vpop.f32.mrf.mxu0 }
 0x789   : > { %v1287_v21 = vpop.f32.mrf.mxu2 }
 0x78a   : > { %v1315_v22 = vpop.f32.mrf.mxu3  ;;  %v1488_v30 = vpack.c.bf16 %v1287_v21, %v1273_v54 }
 0x78b   : > { %v1275_v27 = vpop.f32.mrf.mxu1  ;;  %v1489_v40 = vpack.c.bf16 %v1315_v22, %v1301_v31  ;;  %v1517_v31 = vperm.slane %v4856_v51, 3 }
 0x78c   : > { %v1303_v36 = vpop.f32.mrf.mxu0  ;;  %v1650_v47 = vunpack.c.l.bf16 %v1488_v30  ;;  %v1651_v48 = vunpack.c.h.bf16 %v1488_v30  ;;  %v4141_v30 = vld [vmem:[%s4468_s15 + $0x238] sm:$0xff] }
 0x78d   : > { %v1652_v52 = vunpack.c.l.bf16 %v1489_v40  ;;  %v1653_v53 = vunpack.c.h.bf16 %v1489_v40  ;;  %v1543_v35 = vpack.c.bf16 %v1517_v31, %v1516_v14  ;;  %v4155_v14 = vld [vmem:[%s4468_s15 + $0x2a8] sm:$0xff] }
 0x78e   : > { %v1698_v2 = vadd.f32 %v1682_v28, %v1650_v47  ;;  %v1699_v3 = vadd.f32 %v1683_v50, %v1651_v48  ;;  %v1609_v47 = vperm.slane %v1607_v61, 0  ;;  %v4876_v61 = vpack.c.b16 %v1562_v25, %v1562_v25  ;;  %v4163_v31 = vld [vmem:[%s4468_s15 + $0x2e8] sm:$0xff] }
 0x78f   : > { %v1700_v7 = vadd.f32 %v1684_v55, %v1652_v52  ;;  %v1701_v8 = vadd.f32 %v1685_v56, %v1653_v53 }
 0x790   : > { %v1778_v13 = vmax.f32 %v1698_v2, 0.0  ;;  %v1779_v18 = vmax.f32 %v1699_v3, 0.0  ;;  %v1687_v0 = vunpack.c.l.bf16 %v1609_v47 }
 0x791   : > { %v1289_v57 = vpop.f32.mrf.mxu2  ;;  %v1780_v21 = vmax.f32 %v1700_v7, 0.0  ;;  %v1781_v38 = vmax.f32 %v1701_v8, 0.0  ;;  %v4139_v8 = vld [vmem:[%s4468_s15 + $0x228] sm:$0xff] }
 0x792   : > { %v1496_v58 = vpack.c.bf16 %v1289_v57, %v1275_v27  ;;  %v1317_v59 = vpop.f32.mrf.mxu3  ;;  %v1564_v57 = vunpack.c.l.b16 %v1543_v35 }
 0x793   : > { %v1497_v37 = vpack.c.bf16 %v1317_v59, %v1303_v36  ;;  %v1329_v62 = vpop.f32.mrf.mxu1  ;;  %v4156_v59 = vld [vmem:[%s4468_s15 + $0x2b0] sm:$0xff] }
 0x794   : > { %v1666_v4 = vunpack.c.l.bf16 %v1496_v58  ;;  %v1667_v5 = vunpack.c.h.bf16 %v1496_v58  ;;  %v1357_v6 = vpop.f32.mrf.mxu0  ;;  %v1565_v58 = vunpack.c.h.b16 %v1543_v35  ;;  %v4154_v35 = vld [vmem:[%s4468_s15 + $0x2a0] sm:$0xff] }
 0x795   : > { %v1668_v9 = vunpack.c.l.bf16 %v1497_v37  ;;  %v1669_v49 = vunpack.c.h.bf16 %v1497_v37 }
 0x796   : > { %v1714_v54 = vadd.f32 %v1682_v28, %v1666_v4  ;;  %v1715_v12 = vadd.f32 %v1683_v50, %v1667_v5  ;;  %v1613_v28 = vperm.slane %v1611_v63, 0  ;;  %v1617_v50 = vperm.slane %v1615_v16, 0 }
 0x797   : > { %v1716_v34 = vadd.f32 %v1684_v55, %v1668_v9  ;;  %v1717_v15 = vadd.f32 %v1685_v56, %v1669_v49  ;;  %v4140_v55 = vld [vmem:[%s4468_s15 + $0x230] sm:$0xff]  ;;  %v1686_v63 = vunpack.c.l.bf16 %v1605_v46  ;;  %v4147_v9 = vld [vmem:[%s4468_s15 + $0x268] sm:$0xff]  ;;  %v1580_v49 = vpack.c.b16 %v1564_v57, %v1564_v57  ;;  %v4145_v57 = vld [vmem:[%s4468_s15 + $0x258] sm:$0xff] }
 0x798   : > { %v1794_v19 = vmax.f32 %v1714_v54, 0.0  ;;  %v1795_v20 = vmax.f32 %v1715_v12, 0.0  ;;  %v4148_v56 = vld [vmem:[%s4468_s15 + $0x270] sm:$0xff]  ;;  %v1688_v3 = vunpack.c.l.bf16 %v1613_v28  ;;  %v1689_v4 = vunpack.c.l.bf16 %v1617_v50 }
 0x799   : > { %v1796_v39 = vmax.f32 %v1716_v34, 0.0  ;;  %v1797_v22 = vmax.f32 %v1717_v15, 0.0  ;;  %v1343_v23 = vpop.f32.mrf.mxu2  ;;  %v1581_v54 = vpack.c.b16 %v1565_v58, %v1565_v58  ;;  %v1619_v34 = vpack.i.b16 %v4876_v61, %v4876_v61  ;;  %v4161_v61 = vld [vmem:[%s4468_s15 + $0x2d8] sm:$0xff] }
 0x79a   : > { %v1810_v24 = vpack.c.bf16 %v1794_v19, %v1778_v13  ;;  %v1811_v27 = vpack.c.bf16 %v1795_v20, %v1779_v18  ;;  %v1371_v29 = vpop.f32.mrf.mxu3  ;;  %v1490_v45 = vpack.c.bf16 %v1343_v23, %v1329_v62  ;;  %v1623_v15 = vpack.i.b16 %v4878_v33, %v4878_v33  ;;  %v4138_v23 = vld [vmem:[%s4468_s15 + $0x220] sm:$0xff] }
 0x79b   : > { %v1812_v36 = vpack.c.bf16 %v1796_v39, %v1780_v21  ;;  %v1813_v40 = vpack.c.bf16 %v1797_v22, %v1781_v38  ;;  %v1491_v48 = vpack.c.bf16 %v1371_v29, %v1357_v6  ;;  %v1331_v52 = vpop.f32.mrf.mxu1 }
 0x79c   : > { %2859 = vmatmul.bf16.vlgmr.msrb.gmra.mxu1 %v1810_v24  ;;  %2873 = vmatmul.bf16.vlgmr.msrb.gmra.mxu2 %v1811_v27  ;;  %v1359_v53 = vpop.f32.mrf.mxu0  ;;  %v1654_v37 = vunpack.c.l.bf16 %v1490_v45  ;;  %v1655_v62 = vunpack.c.h.bf16 %v1490_v45  ;;  %v4146_v24 = vld [vmem:[%s4468_s15 + $0x260] sm:$0xff]  ;;  %v1627_v27 = vpack.i.b16 %v1580_v49, %v1580_v49 }
 0x79d   : > { %2887 = vmatmul.bf16.vlgmr.msra.gmra.mxu0 %v1812_v36  ;;  %2901 = vmatmul.bf16.vlgmr.msra.gmra.mxu3 %v1813_v40  ;;  %v1656_v1 = vunpack.c.l.bf16 %v1491_v48  ;;  %v1657_v2 = vunpack.c.h.bf16 %v1491_v48  ;;  %v4162_v36 = vld [vmem:[%s4468_s15 + $0x2e0] sm:$0xff]  ;;  %v1631_v40 = vpack.i.b16 %v1581_v54, %v1581_v54 }
 0x79e   : > { %2963 = vmatpush.bf16.msrb.mxu1 %v4141_v30  ;;  %2977 = vmatpush.bf16.msrb.mxu2 %v4149_v32  ;;  %v1702_v16 = vadd.f32 %v1686_v63, %v1654_v37  ;;  %v1703_v17 = vadd.f32 %v1687_v0, %v1655_v62  ;;  %v1621_v37 = vperm.slane %v1619_v34, 0  ;;  %v1625_v62 = vperm.slane %v1623_v15, 0 }
 0x79f   : > { %2991 = vmatpush.bf16.msra.mxu0 %v4157_v41  ;;  %3005 = vmatpush.bf16.msra.mxu3 %v4165_v43  ;;  %v1704_v19 = vadd.f32 %v1688_v3, %v1656_v1  ;;  %v1705_v20 = vadd.f32 %v1689_v4, %v1657_v2  ;;  %v1633_v1 = vperm.slane %v1631_v40, 0  ;;  %v4136_v2 = vld [vmem:[%s4468_s15 + $0x210] sm:$0xff]  ;;  %v4142_v40 = vld [vmem:[%s4468_s15 + $0x240] sm:$0xff] }
 0x7a0   : > { %v1782_v41 = vmax.f32 %v1702_v16, 0.0  ;;  %v1783_v43 = vmax.f32 %v1703_v17, 0.0 }
 0x7a1   : > { %v1345_v5 = vpop.f32.mrf.mxu2  ;;  %v1784_v46 = vmax.f32 %v1704_v19, 0.0  ;;  %v1785_v47 = vmax.f32 %v1705_v20, 0.0  ;;  %v4151_v20 = vld [vmem:[%s4468_s15 + $0x288] sm:$0xff] }
 0x7a2   : > { %2964 = vmatpush.bf16.msrb.mxu1 %v4140_v55  ;;  %2978 = vmatpush.bf16.msrb.mxu2 %v4148_v56  ;;  %v1498_v6 = vpack.c.bf16 %v1345_v5, %v1331_v52  ;;  %v1373_v7 = vpop.f32.mrf.mxu3  ;;  %v4137_v56 = vld [vmem:[%s4468_s15 + $0x218] sm:$0xff]  ;;  %v4160_v5 = vld [vmem:[%s4468_s15 + $0x2d0] sm:$0xff] }
 0x7a3   : > { %2992 = vmatpush.bf16.msra.mxu0 %v4156_v59  ;;  %3006 = vmatpush.bf16.msra.mxu3 %v4164_v60  ;;  %v1499_v12 = vpack.c.bf16 %v1373_v7, %v1359_v53  ;;  %v1385_v32 = vpop.f32.mrf.mxu1  ;;  %v4153_v60 = vld [vmem:[%s4468_s15 + $0x298] sm:$0xff] }
 0x7a4   : > { %v1670_v13 = vunpack.c.l.bf16 %v1498_v6  ;;  %v1671_v18 = vunpack.c.h.bf16 %v1498_v6  ;;  %v1413_v45 = vpop.f32.mrf.mxu0 }
 0x7a5   : > { %v1672_v21 = vunpack.c.l.bf16 %v1499_v12  ;;  %v1673_v38 = vunpack.c.h.bf16 %v1499_v12 }
 0x7a6   : > { %v1718_v39 = vadd.f32 %v1686_v63, %v1670_v13  ;;  %v1719_v22 = vadd.f32 %v1687_v0, %v1671_v18  ;;  %2965 = vmatpush.bf16.msrb.mxu1 %v4139_v8  ;;  %2979 = vmatpush.bf16.msrb.mxu2 %v4147_v9  ;;  %v1629_v0 = vperm.slane %v1627_v27, 0  ;;  %v1690_v8 = vunpack.c.l.bf16 %v1621_v37  ;;  %v4135_v13 = vld [vmem:[%s4468_s15 + $0x208] sm:$0xff] }
 0x7a7   : > { %v1720_v29 = vadd.f32 %v1688_v3, %v1672_v21  ;;  %v1721_v30 = vadd.f32 %v1689_v4, %v1673_v38  ;;  %2993 = vmatpush.bf16.msra.mxu0 %v4155_v14  ;;  %3007 = vmatpush.bf16.msra.mxu3 %v4163_v31  ;;  %v4144_v3 = vld [vmem:[%s4468_s15 + $0x250] sm:$0xff]  ;;  %v1691_v9 = vunpack.c.l.bf16 %v1625_v62  ;;  %v1693_v14 = vunpack.c.l.bf16 %v1633_v1  ;;  %v4143_v18 = vld [vmem:[%s4468_s15 + $0x248] sm:$0xff] }
 0x7a8   : > { %v1798_v25 = vmax.f32 %v1718_v39, 0.0  ;;  %v1799_v44 = vmax.f32 %v1719_v22, 0.0  ;;  %v4152_v4 = vld [vmem:[%s4468_s15 + $0x290] sm:$0xff]  ;;  %v1692_v12 = vunpack.c.l.bf16 %v1629_v0  ;;  %v4159_v21 = vld [vmem:[%s4468_s15 + $0x2c8] sm:$0xff] }
 0x7a9   : > { %v1800_v48 = vmax.f32 %v1720_v29, 0.0  ;;  %v1801_v28 = vmax.f32 %v1721_v30, 0.0  ;;  %v1399_v50 = vpop.f32.mrf.mxu2 }
 0x7aa   : > { %v1814_v52 = vpack.c.bf16 %v1798_v25, %v1782_v41  ;;  %v1815_v53 = vpack.c.bf16 %v1799_v44, %v1783_v43  ;;  %2966 = vmatpush.bf16.msrb.mxu1 %v4138_v23  ;;  %2980 = vmatpush.bf16.msrb.mxu2 %v4146_v24  ;;  %v1427_v55 = vpop.f32.mrf.mxu3  ;;  %v1492_v33 = vpack.c.bf16 %v1399_v50, %v1385_v32  ;;  %v1518_v41 = vperm.slane %v4856_v51, 4 }
 0x7ab   : > { %v1816_v58 = vpack.c.bf16 %v1800_v48, %v1784_v46  ;;  %v1817_v59 = vpack.c.bf16 %v1801_v28, %v1785_v47  ;;  %2994 = vmatpush.bf16.msra.mxu0 %v4154_v35  ;;  %3008 = vmatpush.bf16.msra.mxu3 %v4162_v36  ;;  %v1493_v63 = vpack.c.bf16 %v1427_v55, %v1413_v45  ;;  %v1387_v31 = vpop.f32.mrf.mxu1  ;;  %v4134_v36 = vld [vmem:[%s4468_s15 + $0x200] sm:$0xff]  ;;  %v1519_v43 = vperm.slane %v4856_v51, 5  ;;  %v4173_v55 = vld [vmem:[%s4468_s15 + $0x338] sm:$0xff] }
 0x7ac   : > { %2915 = vmatmul.bf16.vlgmr.msra.gmra.mxu1 %v1814_v52  ;;  %2929 = vmatmul.bf16.vlgmr.msra.gmra.mxu2 %v1815_v53  ;;  %v1658_v6 = vunpack.c.l.bf16 %v1492_v33  ;;  %v1659_v7 = vunpack.c.h.bf16 %v1492_v33  ;;  %v1415_v15 = vpop.f32.mrf.mxu0  ;;  %v4150_v45 = vld [vmem:[%s4468_s15 + $0x280] sm:$0xff]  ;;  %v1520_v47 = vperm.slane %v4856_v51, 6  ;;  %v1521_v48 = vperm.slane %v4856_v51, 7  ;;  %v4197_v33 = vld [vmem:[%s4468_s15 + $0x3f8] sm:$0xff] }
 0x7ad   : > { %2943 = vmatmul.bf16.vlgmr.msrb.gmra.mxu0 %v1816_v58  ;;  %2957 = vmatmul.bf16.vlgmr.msrb.gmra.mxu3 %v1817_v59  ;;  %v1660_v49 = vunpack.c.l.bf16 %v1493_v63  ;;  %v1661_v54 = vunpack.c.h.bf16 %v1493_v63  ;;  %v4158_v46 = vld [vmem:[%s4468_s15 + $0x2c0] sm:$0xff]  ;;  %v1544_v0 = vpack.c.bf16 %v1519_v43, %v1518_v41  ;;  %v4185_v43 = vld [vmem:[%s4468_s15 + $0x398] sm:$0xff] }
 0x7ae   : > { %2967 = vmatpush.bf16.msrb.mxu1 %v4137_v56  ;;  %2981 = vmatpush.bf16.msrb.mxu2 %v4145_v57  ;;  %v1706_v38 = vadd.f32 %v1690_v8, %v1658_v6  ;;  %v1707_v39 = vadd.f32 %v1691_v9, %v1659_v7  ;;  %v4181_v56 = vld [vmem:[%s4468_s15 + $0x378] sm:$0xff]  ;;  %v4188_v6 = vld [vmem:[%s4468_s15 + $0x3b0] sm:$0xff] }
 0x7af   : > { %2995 = vmatpush.bf16.msra.mxu0 %v4153_v60  ;;  %3009 = vmatpush.bf16.msra.mxu3 %v4161_v61  ;;  %v1708_v24 = vadd.f32 %v1692_v12, %v1660_v49  ;;  %v1709_v27 = vadd.f32 %v1693_v14, %v1661_v54  ;;  %v4189_v61 = vld [vmem:[%s4468_s15 + $0x3b8] sm:$0xff]  ;;  %v4196_v7 = vld [vmem:[%s4468_s15 + $0x3f0] sm:$0xff]  ;;  %v1566_v49 = vunpack.c.l.b16 %v1544_v0  ;;  %v1567_v54 = vunpack.c.h.b16 %v1544_v0 }
 0x7b0   : > { %v1786_v28 = vmax.f32 %v1706_v38, 0.0  ;;  %v1787_v50 = vmax.f32 %v1707_v39, 0.0  ;;  %v4186_v38 = vld [vmem:[%s4468_s15 + $0x3a0] sm:$0xff] }
 0x7b1   : > { %v1401_v34 = vpop.f32.mrf.mxu2  ;;  %v1788_v57 = vmax.f32 %v1708_v24, 0.0  ;;  %v1789_v58 = vmax.f32 %v1709_v27, 0.0  ;;  %v4194_v39 = vld [vmem:[%s4468_s15 + $0x3e0] sm:$0xff] }
 0x7b2   : > { %2968 = vmatpush.bf16.msrb.mxu1 %v4136_v2  ;;  %2982 = vmatpush.bf16.msrb.mxu2 %v4144_v3  ;;  %v1500_v16 = vpack.c.bf16 %v1401_v34, %v1387_v31  ;;  %v1429_v17 = vpop.f32.mrf.mxu3  ;;  %v1545_v2 = vpack.c.bf16 %v1521_v48, %v1520_v47  ;;  %v4172_v3 = vld [vmem:[%s4468_s15 + $0x330] sm:$0xff]  ;;  %v4171_v31 = vld [vmem:[%s4468_s15 + $0x328] sm:$0xff] }
 0x7b3   : > { %2996 = vmatpush.bf16.msra.mxu0 %v4152_v4  ;;  %3010 = vmatpush.bf16.msra.mxu3 %v4160_v5  ;;  %v1501_v19 = vpack.c.bf16 %v1429_v17, %v1415_v15  ;;  %v4180_v4 = vld [vmem:[%s4468_s15 + $0x370] sm:$0xff]  ;;  %v4179_v34 = vld [vmem:[%s4468_s15 + $0x368] sm:$0xff]  ;;  %v1582_v17 = vpack.c.b16 %v1566_v49, %v1566_v49 }
 0x7b4   : > { %v1674_v22 = vunpack.c.l.bf16 %v1500_v16  ;;  %v1675_v23 = vunpack.c.h.bf16 %v1500_v16  ;;  %v4187_v15 = vld [vmem:[%s4468_s15 + $0x3a8] sm:$0xff] }
 0x7b5   : > { %v1676_v29 = vunpack.c.l.bf16 %v1501_v19  ;;  %v1677_v30 = vunpack.c.h.bf16 %v1501_v19  ;;  %v4195_v16 = vld [vmem:[%s4468_s15 + $0x3e8] sm:$0xff] }
 0x7b6   : > { %v1722_v32 = vadd.f32 %v1690_v8, %v1674_v22  ;;  %v1723_v35 = vadd.f32 %v1691_v9, %v1675_v23  ;;  %2969 = vmatpush.bf16.msrb.mxu1 %v4135_v13  ;;  %2983 = vmatpush.bf16.msrb.mxu2 %v4143_v18  ;;  %v1441_v8 = vpop.f32.mrf.mxu1  ;;  %v1469_v9 = vpop.f32.mrf.mxu0  ;;  %v1583_v13 = vpack.c.b16 %v1567_v54, %v1567_v54 }
 0x7b7   : > { %v1724_v25 = vadd.f32 %v1692_v12, %v1676_v29  ;;  %v1725_v44 = vadd.f32 %v1693_v14, %v1677_v30  ;;  %2997 = vmatpush.bf16.msra.mxu0 %v4151_v20  ;;  %3011 = vmatpush.bf16.msra.mxu3 %v4159_v21  ;;  %v1568_v12 = vunpack.c.l.b16 %v1545_v2  ;;  %v1569_v14 = vunpack.c.h.b16 %v1545_v2  ;;  %v4170_v20 = vld [vmem:[%s4468_s15 + $0x320] sm:$0xff]  ;;  %v4167_v2 = vld [vmem:[%s4468_s15 + $0x308] sm:$0xff] }
 0x7b8   : > { %v1802_v52 = vmax.f32 %v1722_v32, 0.0  ;;  %v1803_v53 = vmax.f32 %v1723_v35, 0.0  ;;  %v4178_v21 = vld [vmem:[%s4468_s15 + $0x360] sm:$0xff]  ;;  %v1635_v23 = vpack.i.b16 %v1582_v17, %v1582_v17  ;;  %v1639_v24 = vpack.i.b16 %v1583_v13, %v1583_v13  ;;  %v4169_v35 = vld [vmem:[%s4468_s15 + $0x318] sm:$0xff] }
 0x7b9   : > { %v1804_v59 = vmax.f32 %v1724_v25, 0.0  ;;  %v1805_v60 = vmax.f32 %v1725_v44, 0.0  ;;  %v1455_v1 = vpop.f32.mrf.mxu2  ;;  %v1584_v18 = vpack.c.b16 %v1568_v12, %v1568_v12  ;;  %v1585_v19 = vpack.c.b16 %v1569_v14, %v1569_v14  ;;  %v4193_v25 = vld [vmem:[%s4468_s15 + $0x3d8] sm:$0xff]  ;;  %v4182_v17 = vld [vmem:[%s4468_s15 + $0x380] sm:$0xff] }
 0x7ba   : > { %v1818_v37 = vpack.c.bf16 %v1802_v52, %v1786_v28  ;;  %v1819_v62 = vpack.c.bf16 %v1803_v53, %v1787_v50  ;;  %2970 = vmatpush.bf16.msrb.mxu1 %v4134_v36  ;;  %2984 = vmatpush.bf16.msrb.mxu2 %v4142_v40  ;;  %v1483_v5 = vpop.f32.mrf.mxu3  ;;  %v4177_v36 = vld [vmem:[%s4468_s15 + $0x358] sm:$0xff]  ;;  %v1641_v47 = vperm.slane %v1639_v24, 0  ;;  %v4168_v52 = vld [vmem:[%s4468_s15 + $0x310] sm:$0xff]  ;;  %v4190_v13 = vld [vmem:[%s4468_s15 + $0x3c0] sm:$0xff] }
 0x7bb   : > { %v1820_v51 = vpack.c.bf16 %v1804_v59, %v1788_v57  ;;  %v1821_v63 = vpack.c.bf16 %v1805_v60, %v1789_v58  ;;  %2998 = vmatpush.bf16.msra.mxu0 %v4150_v45  ;;  %3012 = vmatpush.bf16.msra.mxu3 %v4158_v46  ;;  %v1643_v29 = vpack.i.b16 %v1584_v18, %v1584_v18  ;;  %v1637_v46 = vperm.slane %v1635_v23, 0  ;;  %v4176_v53 = vld [vmem:[%s4468_s15 + $0x350] sm:$0xff] }
 0x7bc   : > { %v1647_v30 = vpack.i.b16 %v1585_v19, %v1585_v19  ;;  %v1494_v45 = vpack.c.bf16 %v1455_v1, %v1441_v8  ;;  %v1495_v48 = vpack.c.bf16 %v1483_v5, %v1469_v9  ;;  %v4184_v57 = vld [vmem:[%s4468_s15 + $0x390] sm:$0xff] }
 0x7bd   : > { %2971 = vmatmul.bf16.vlgmr.msrb.gmra.mxu1 %v1818_v37  ;;  %2985 = vmatmul.bf16.vlgmr.msrb.gmra.mxu2 %v1819_v62  ;;  %v1645_v28 = vperm.slane %v1643_v29, 0  ;;  %v4192_v58 = vld [vmem:[%s4468_s15 + $0x3d0] sm:$0xff]  ;;  %v1694_v37 = vunpack.c.l.bf16 %v1637_v46  ;;  %v1695_v62 = vunpack.c.l.bf16 %v1641_v47 }
 0x7be   : > { %3019 = vmatpush.bf16.msra.mxu1 %v4173_v55  ;;  %3033 = vmatpush.bf16.msra.mxu2 %v4181_v56  ;;  %v1443_v32 = vpop.f32.mrf.mxu1  ;;  %v1471_v40 = vpop.f32.mrf.mxu0  ;;  %v1649_v50 = vperm.slane %v1647_v30, 0 }
 0x7bf   : > { %3047 = vmatpush.bf16.msrb.mxu0 %v4189_v61  ;;  %3061 = vmatpush.bf16.msrb.mxu3 %v4197_v33  ;;  %v1662_v61 = vunpack.c.l.bf16 %v1494_v45  ;;  %v1663_v33 = vunpack.c.h.bf16 %v1494_v45  ;;  %v1696_v0 = vunpack.c.l.bf16 %v1645_v28 }
 0x7c0   : > { %2999 = vmatmul.bf16.vlgmr.msra.gmra.mxu0 %v1820_v51  ;;  %3013 = vmatmul.bf16.vlgmr.msra.gmra.mxu3 %v1821_v63  ;;  %v1664_v51 = vunpack.c.l.bf16 %v1495_v48  ;;  %v1665_v63 = vunpack.c.h.bf16 %v1495_v48  ;;  %v1697_v1 = vunpack.c.l.bf16 %v1649_v50 }
 0x7c1   : > { %v1457_v22 = vpop.f32.mrf.mxu2  ;;  %v1710_v49 = vadd.f32 %v1694_v37, %v1662_v61  ;;  %v1711_v54 = vadd.f32 %v1695_v62, %v1663_v33 }
 0x7c2   : > { %3020 = vmatpush.bf16.msra.mxu1 %v4172_v3  ;;  %3034 = vmatpush.bf16.msra.mxu2 %v4180_v4  ;;  %v1485_v27 = vpop.f32.mrf.mxu3  ;;  %v1502_v41 = vpack.c.bf16 %v1457_v22, %v1443_v32  ;;  %v4175_v3 = vld [vmem:[%s4468_s15 + $0x348] sm:$0xff]  ;;  %v1712_v12 = vadd.f32 %v1696_v0, %v1664_v51  ;;  %v1713_v14 = vadd.f32 %v1697_v1, %v1665_v63 }
 0x7c3   : > { %3048 = vmatpush.bf16.msrb.mxu0 %v4188_v6  ;;  %3062 = vmatpush.bf16.msrb.mxu3 %v4196_v7  ;;  %v1503_v44 = vpack.c.bf16 %v1485_v27, %v1471_v40  ;;  %v4183_v6 = vld [vmem:[%s4468_s15 + $0x388] sm:$0xff] }
 0x7c4   : > { %v1678_v55 = vunpack.c.l.bf16 %v1502_v41  ;;  %v1679_v56 = vunpack.c.h.bf16 %v1502_v41  ;;  %v4191_v7 = vld [vmem:[%s4468_s15 + $0x3c8] sm:$0xff] }
 0x7c5   : > { %v1680_v59 = vunpack.c.l.bf16 %v1503_v44  ;;  %v1681_v60 = vunpack.c.h.bf16 %v1503_v44 }
 0x7c6   : > { %3021 = vmatpush.bf16.msra.mxu1 %v4171_v31  ;;  %3035 = vmatpush.bf16.msra.mxu2 %v4179_v34  ;;  %v1726_v4 = vadd.f32 %v1694_v37, %v1678_v55  ;;  %v1727_v5 = vadd.f32 %v1695_v62, %v1679_v56  ;;  %v4166_v31 = vld [vmem:[%s4468_s15 + $0x300] sm:$0xff] }
 0x7c7   : > { %3049 = vmatpush.bf16.msrb.mxu0 %v4187_v15  ;;  %3063 = vmatpush.bf16.msrb.mxu3 %v4195_v16  ;;  %v1728_v8 = vadd.f32 %v1696_v0, %v1680_v59  ;;  %v1729_v9 = vadd.f32 %v1697_v1, %v1681_v60  ;;  %v4174_v34 = vld [vmem:[%s4468_s15 + $0x340] sm:$0xff] }
 0x7c8   : > { %v1806_v15 = vmax.f32 %v1726_v4, 0.0  ;;  %v1807_v16 = vmax.f32 %v1727_v5, 0.0 }
 0x7c9   : > { %v1808_v18 = vmax.f32 %v1728_v8, 0.0  ;;  %v1809_v19 = vmax.f32 %v1729_v9, 0.0 }
 0x7ca   : > { %3022 = vmatpush.bf16.msra.mxu1 %v4170_v20  ;;  %3036 = vmatpush.bf16.msra.mxu2 %v4178_v21  ;;  %v1790_v20 = vmax.f32 %v1710_v49, 0.0  ;;  %v1791_v21 = vmax.f32 %v1711_v54, 0.0 }
 0x7cb   : > { %3050 = vmatpush.bf16.msrb.mxu0 %v4186_v38  ;;  %3064 = vmatpush.bf16.msrb.mxu3 %v4194_v39  ;;  %v1792_v38 = vmax.f32 %v1712_v12, 0.0  ;;  %v1793_v39 = vmax.f32 %v1713_v14, 0.0 }
 0x7cc   : > { %v1822_v22 = vpack.c.bf16 %v1806_v15, %v1790_v20  ;;  %v1823_v23 = vpack.c.bf16 %v1807_v16, %v1791_v21 }
 0x7cd   : > { %v1824_v24 = vpack.c.bf16 %v1808_v18, %v1792_v38  ;;  %v1825_v27 = vpack.c.bf16 %v1809_v19, %v1793_v39 }
 0x7ce   : > { %3023 = vmatpush.bf16.msra.mxu1 %v4169_v35  ;;  %3037 = vmatpush.bf16.msra.mxu2 %v4177_v36 }
 0x7cf   : > { %3051 = vmatpush.bf16.msrb.mxu0 %v4185_v43  ;;  %3065 = vmatpush.bf16.msrb.mxu3 %v4193_v25 }
 0x7d2   : > { %3024 = vmatpush.bf16.msra.mxu1 %v4168_v52  ;;  %3038 = vmatpush.bf16.msra.mxu2 %v4176_v53 }
 0x7d3   : > { %3052 = vmatpush.bf16.msrb.mxu0 %v4184_v57  ;;  %3066 = vmatpush.bf16.msrb.mxu3 %v4192_v58 }
 0x7d6   : > { %3025 = vmatpush.bf16.msra.mxu1 %v4167_v2  ;;  %3039 = vmatpush.bf16.msra.mxu2 %v4175_v3 }
 0x7d7   : > { %3053 = vmatpush.bf16.msrb.mxu0 %v4183_v6  ;;  %3067 = vmatpush.bf16.msrb.mxu3 %v4191_v7 }
 0x7da   : > { %3026 = vmatpush.bf16.msra.mxu1 %v4166_v31  ;;  %3040 = vmatpush.bf16.msra.mxu2 %v4174_v34 }
 0x7db   : > { %3054 = vmatpush.bf16.msrb.mxu0 %v4182_v17  ;;  %3068 = vmatpush.bf16.msrb.mxu3 %v4190_v13 }
 0x7dd   : > { %3027 = vmatmul.bf16.vlgmr.msra.gmra.mxu1 %v1822_v22  ;;  %3041 = vmatmul.bf16.vlgmr.msra.gmra.mxu2 %v1823_v23 }
 0x7de   : > { %3055 = vmatmul.bf16.vlgmr.msrb.gmra.mxu0 %v1824_v24  ;;  %3069 = vmatmul.bf16.vlgmr.msrb.gmra.mxu3 %v1825_v27 }
 0x819   : > { %v2860_v29 = vpop.f32.mrf.mxu1 }
 0x81a   : > { %v2888_v30 = vpop.f32.mrf.mxu0  ;;  %v2861_v46 = vadd.f32 %v2860_v29, %v4652_v42 }
 0x81f   : > { %v2874_v32 = vpop.f32.mrf.mxu2 }
 0x820   : > { %v2902_v35 = vpop.f32.mrf.mxu3  ;;  %v2875_v48 = vadd.f32 %v2874_v32, %v2861_v46 }
 0x821   : > { %v2862_v36 = vpop.f32.mrf.mxu1 }
 0x822   : > { %v2890_v40 = vpop.f32.mrf.mxu0  ;;  %v2889_v50 = vadd.f32 %v2888_v30, %v2875_v48  ;;  %v2863_v52 = vadd.f32 %v2862_v36, %v4652_v42 }
 0x824   : > { %v2903_v56 = vadd.f32 %v2902_v35, %v2889_v50 }
 0x827   : > { %v2876_v41 = vpop.f32.mrf.mxu2 }
 0x828   : > { %v2904_v43 = vpop.f32.mrf.mxu3  ;;  %v2877_v57 = vadd.f32 %v2876_v41, %v2863_v52 }
 0x829   : > { %v2916_v25 = vpop.f32.mrf.mxu1 }
 0x82a   : > { %v2944_v44 = vpop.f32.mrf.mxu0  ;;  %v2917_v59 = vadd.f32 %v2916_v25, %v2903_v56  ;;  %v2891_v61 = vadd.f32 %v2890_v40, %v2877_v57 }
 0x82c   : > { %v2905_v37 = vadd.f32 %v2904_v43, %v2891_v61 }
 0x82f   : > { %v2930_v45 = vpop.f32.mrf.mxu2 }
 0x830   : > { %v2958_v47 = vpop.f32.mrf.mxu3  ;;  %v2931_v33 = vadd.f32 %v2930_v45, %v2917_v59 }
 0x831   : > { %v2918_v28 = vpop.f32.mrf.mxu1 }
 0x832   : > { %v2946_v53 = vpop.f32.mrf.mxu0  ;;  %v2945_v62 = vadd.f32 %v2944_v44, %v2931_v33  ;;  %v2919_v0 = vadd.f32 %v2918_v28, %v2905_v37 }
 0x834   : > { %v2959_v2 = vadd.f32 %v2958_v47, %v2945_v62 }
 0x837   : > { %v2932_v55 = vpop.f32.mrf.mxu2 }
 0x838   : > { %v2960_v58 = vpop.f32.mrf.mxu3  ;;  %v2933_v3 = vadd.f32 %v2932_v55, %v2919_v0  ;;  %v3123_v0 = vpop.permute.xlu1 %3122 }
 0x83a   : > { %v2972_v60 = vpop.f32.mrf.mxu1  ;;  %v2947_v6 = vadd.f32 %v2946_v53, %v2933_v3 }
 0x83b   : > { %v2973_v5 = vadd.f32 %v2972_v60, %v2959_v2 }
 0x83c   : > { %v2961_v49 = vadd.f32 %v2960_v58, %v2947_v6 }
 0x83d   : > { %v3000_v51 = vpop.f32.mrf.mxu0 }
 0x840   : > { %v2986_v63 = vpop.f32.mrf.mxu2 }
 0x841   : > { %v2987_v7 = vadd.f32 %v2986_v63, %v2973_v5 }
 0x842   : > { %v2974_v4 = vpop.f32.mrf.mxu1 }
 0x843   : > { %v3014_v1 = vpop.f32.mrf.mxu3  ;;  %v3001_v54 = vadd.f32 %v3000_v51, %v2987_v7  ;;  %v2975_v31 = vadd.f32 %v2974_v4, %v2961_v49 }
 0x845   : > { %v3002_v8 = vpop.f32.mrf.mxu0  ;;  %v3015_v34 = vadd.f32 %v3014_v1, %v3001_v54 }
 0x848   : > { %v2988_v9 = vpop.f32.mrf.mxu2 }
 0x849   : > { %v2989_v15 = vadd.f32 %v2988_v9, %v2975_v31 }
 0x84b   : > { %v3016_v12 = vpop.f32.mrf.mxu3  ;;  %v3003_v18 = vadd.f32 %v3002_v8, %v2989_v15 }
 0x84d   : > { %v3017_v39 = vadd.f32 %v3016_v12, %v3003_v18 }
 0x85a   : > { %v3028_v14 = vpop.f32.mrf.mxu1 }
 0x85b   : > { %v3029_v16 = vadd.f32 %v3028_v14, %v3015_v34  ;;  %v3056_v17 = vpop.f32.mrf.mxu0 }
 0x860   : > { %v3042_v13 = vpop.f32.mrf.mxu2 }
 0x861   : > { %v3043_v19 = vadd.f32 %v3042_v13, %v3029_v16  ;;  %v3070_v20 = vpop.f32.mrf.mxu3 }
 0x862   : > { %v3030_v38 = vpop.f32.mrf.mxu1 }
 0x863   : > { %v3057_v21 = vadd.f32 %v3056_v17, %v3043_v19  ;;  %v3031_v23 = vadd.f32 %v3030_v38, %v3017_v39  ;;  %v3058_v32 = vpop.f32.mrf.mxu0 }
 0x865   : > { %v3071_v22 = vadd.f32 %v3070_v20, %v3057_v21 }
 0x867   : > { %v3075_v24 = vadd.f32 %v3071_v22, %v4717_v10 }
 0x868   : > { %v3044_v27 = vpop.f32.mrf.mxu2 }
 0x869   : > { %v3045_v29 = vadd.f32 %v3044_v27, %v3031_v23  ;;  %v3077_v30 = vsel %vm555_vm5, %v3075_v24, 0.0  ;;  %v3072_v36 = vpop.f32.mrf.mxu3 }
 0x86a   : > { %3078 = vadd.xlane.f32.xlu2 %v3077_v30 }
 0x86b   : > { %v3059_v35 = vadd.f32 %v3058_v32, %v3045_v29 }
 0x86d   : > { %v3073_v40 = vadd.f32 %v3072_v36, %v3059_v35 }
 0x86f   : > { %v3076_v41 = vadd.f32 %v3073_v40, %v4719_v11 }
 0x871   : > { %v3080_v43 = vsel %vm555_vm5, %v3076_v41, 0.0 }
 0x872   : > { %3081 = vadd.xlane.f32.xlu2 %v3080_v43 }
 0x8dd   : > { %v3079_v25 = vpop.xlane.xlu2 %3078 }
 0x8de   : > { %v3083_v44 = vmul.f32 %v3079_v25, %v4656_v26 }
 0x8e0   : > { %v3085_v45 = vsub.f32 %v3075_v24, %v3083_v44 }
 0x8e2   : > { %v3087_v46 = vmul.f32 %v3085_v45, %v3085_v45 }
 0x8e4   : > { %v3089_v10 = vsel %vm555_vm5, %v3087_v46, 0.0 }
 0x8e5   : > { %3090 = vadd.xlane.f32.xlu0 %v3089_v10  ;;  %v3082_v47 = vpop.xlane.xlu2 %3081 }
 0x8e6   : > { %v3084_v48 = vmul.f32 %v3082_v47, %v4656_v26 }
 0x8e8   : > { %v3086_v28 = vsub.f32 %v3076_v41, %v3084_v48 }
 0x8ea   : > { %v3088_v50 = vmul.f32 %v3086_v28, %v3086_v28 }
 0x8ec   : > { %v3092_v52 = vsel %vm555_vm5, %v3088_v50, 0.0 }
 0x8ed   : > { %3093 = vadd.xlane.f32.xlu2 %v3092_v52 }
 0x905   : > { %3127 = vrot.lane.b32.xlu2 %v4652_v42, %s4370_s25 }
 0x958   : > { %v3091_v11 = vpop.xlane.xlu0 %3090 }
 0x959   : > { %v3095_v53 = vmul.f32 %v3091_v11, %v4656_v26 }
 0x95b   : > { %v3097_v55 = vadd.f32 1e-05, %v3095_v53 }
 0x95d   : > { %4311 = vrsqrt.f32 %v3097_v55  ;;  %vm3105_vm14 = vweird.f32 %v3097_v55 }
 0x960   : > { %v3094_v56 = vpop.xlane.xlu2 %3093 }
 0x961   : > { %v3096_v57 = vmul.f32 %v3094_v56, %v4656_v26 }
 0x963   : > { %v4312_v58 = vpop.eup %4311  ;;  %v3098_v59 = vadd.f32 1e-05, %v3096_v57 }
 0x964   : > { %v3100_v60 = vmul.f32 %v4312_v58, %v3097_v55  ;;  %vm3106_vm13 = vweird.f32 %v4312_v58 }
 0x965   : > { %4313 = vrsqrt.f32 %v3098_v59  ;;  %vm3107_vm15 = vmor %vm3105_vm14, %vm3106_vm13  ;;  %vm3115_vm1 = vweird.f32 %v3098_v59 }
 0x966   : > { %v3101_v61 = vmul.f32 %v4312_v58, %v3100_v60 }
 0x968   : > { %v3102_v33 = vmul.f32 0.5, %v3101_v61  ;;  %v3128_v4 = vpop.permute.xlu2 %3127 }
 0x96a   : > { %v3103_v37 = vsub.f32 1.5, %v3102_v33 }
 0x96b   : > { %v4314_v62 = vpop.eup %4313 }
 0x96c   : > { %v3110_v51 = vmul.f32 %v4314_v62, %v3098_v59  ;;  %v3104_v42 = vmul.f32 %v4312_v58, %v3103_v37  ;;  %vm3116_vm0 = vweird.f32 %v4314_v62 }
 0x96d   : > { %vm3117_vm2 = vmor %vm3115_vm1, %vm3116_vm0 }
 0x96e   : > { %v3111_v63 = vmul.f32 %v4314_v62, %v3110_v51  ;;  %v3108_v1 = vsel %vm3107_vm15, %v4312_v58, %v3104_v42 }
 0x96f   : > { %v3119_v2 = vmul.f32 %v3108_v1, %v3085_v45 }
 0x970   : > { %v3112_v3 = vmul.f32 0.5, %v3111_v63 }
 0x971   : > { %v3125_v26 = vmul.f32 %v3123_v0, %v3119_v2 }
 0x972   : > { %v3113_v5 = vsub.f32 1.5, %v3112_v3 }
 0x973   : > { %v3130_v6 = vadd.f32 %v3128_v4, %v3125_v26 }
 0x974   : > { %v3114_v7 = vmul.f32 %v4314_v62, %v3113_v5 }
 0x975   : > { %3132 = vst.msk [vmem:[#allocation2] sm:$0xff] %vm555_vm5, %v3130_v6 }
 0x976   : > { %v3118_v8 = vsel %vm3117_vm2, %v4314_v62, %v3114_v7 }
 0x977   : > { %v3120_v9 = vmul.f32 %v3118_v8, %v3086_v28 }
 0x979   : > { %v3126_v49 = vmul.f32 %v3123_v0, %v3120_v9  ;;  %3137 = sbr.rel (%p4023_p5) target bundleno = 2829 (0xb0d), region = 72 }
 0x97b   : > { %v3131_v54 = vadd.f32 %v3128_v4, %v3126_v49 }
 0x97d   : > { %3133 = vst.msk [vmem:[#allocation2 + $0x8] sm:$0xff] %vm555_vm5, %v3131_v54 }
 0x97e   : > { %v3141_v12 = vld [vmem:[%s4989_s3 + $0x18] sm:$0xff]  ;;  %v3140_v14 = vld [vmem:[%s4989_s3 + $0x10] sm:$0xff]  ;;  %v3139_v31 = vld [vmem:[%s4989_s3 + $0x8] sm:$0xff] }
 0x97f   : > { %3164 = vmatpush.msra.mxu0 %v3141_v12  ;;  %4205 = vmatpush.msra.mxu1 %v3141_v12  ;;  %v3138_v34 = vld [vmem:[%s4989_s3] sm:$0xff] }
 0x980   : > { %v4315_v15 = vld [vmem:[%s4990_s4] ss:$0 sm:$0xff] }
 0x981   : > { %3165 = vmatpush.msra.mxu0 %v3140_v14  ;;  %4206 = vmatpush.msra.mxu1 %v3140_v14 }
 0x983   : > { %3166 = vmatpush.msra.mxu0 %v3139_v31  ;;  %4207 = vmatpush.msra.mxu1 %v3139_v31 }
 0x985   : > { %3167 = vmatpush.msra.mxu0 %v3138_v34  ;;  %4208 = vmatpush.msra.mxu1 %v3138_v34 }
 0x986   : > { %4024 = vmatmul.msk.f32.vlgmr.msra.gmra.mxu0 %vm555_vm5, %v3130_v6  ;;  %4025 = vmatmul.msk.f32.vlgmr.msra.gmra.mxu1 %vm555_vm5, %v3131_v54 }
 0xa03   : > { %v3169_v16 = vpop.f32.mrf.mxu0  ;;  %v3172_v13 = vpop.f32.mrf.mxu1 }
 0xa04   : > { %v3170_v17 = vadd.f32 %v4315_v15, %v3169_v16  ;;  %v3173_v18 = vadd.f32 %v4315_v15, %v3172_v13 }
 0xa06   : > { %3175 = vmax.xlane.f32.xlu0 %v3170_v17 }
 0xa0e   : > { %3177 = vmax.xlane.f32.xlu0 %v3173_v18 }
 0xa79   : > { %v3176_v19 = vpop.xlane.xlu0 %3175 }
 0xa7a   : > { %v3179_v20 = vsub.f32 %v3170_v17, %v3176_v19 }
 0xa7c   : > { %v3181_v21 = vmul.f32 1.442695, %v3179_v20 }
 0xa7e   : > { %4316 = vpow2.f32 %v3181_v21 }
 0xa81   : > { %v3178_v38 = vpop.xlane.xlu0 %3177 }
 0xa82   : > { %v3180_v39 = vsub.f32 %v3173_v18, %v3178_v38 }
 0xa84   : > { %v4317_v22 = vpop.eup %4316  ;;  %v3183_v23 = vmul.f32 1.442695, %v3180_v39 }
 0xa85   : > { %3185 = vadd.xlane.f32.xlu1 %v4317_v22 }
 0xa86   : > { %4318 = vpow2.f32 %v3183_v23 }
 0xa8c   : > { %v4319_v24 = vpop.eup %4318 }
 0xa8d   : > { %3187 = vadd.xlane.f32.xlu1 %v4319_v24 }
 0xaf8   : > { %v3186_v27 = vpop.xlane.xlu1 %3185 }
 0xaf9   : > { %4320 = vlog2.f32 %v3186_v27 }
 0xaff   : > { %v4321_v29 = vpop.eup %4320 }
 0xb00   : > { %v3190_v30 = vmul.f32 0.6931472, %v4321_v29  ;;  %v3188_v32 = vpop.xlane.xlu1 %3187 }
 0xb01   : > { %4322 = vlog2.f32 %v3188_v32 }
 0xb02   : > { %v3193_v35 = vsub.f32 %v3179_v20, %v3190_v30 }
 0xb04   : > { %3195 = vst [vmem:[#allocation3] sm:$0xff] %v3193_v35 }
 0xb07   : > { %v4323_v36 = vpop.eup %4322 }
 0xb08   : > { %v3192_v40 = vmul.f32 0.6931472, %v4323_v36 }
 0xb0a   : > { %v3194_v41 = vsub.f32 %v3180_v39, %v3192_v40 }
 0xb0c   : > { %3196 = vst [vmem:[#allocation3 + $0x8] sm:$0xff] %v3194_v41 }
 0xb0d PF: > { %p4213_p6 = scmp.eq.s32.totalorder %s4444_s18, 3  ;;  %s4376_s14 = smov [#allocation3]  }
 0xb0e   : > { %s3202_s16 = sshll.u32 %s4376_s14, 4  ;;  %s3204_s6 = sshll.u32 %s4997_s11, 4  ;;  %s3203_s16 = int_to_ptr.vmem [resolvable:$true] %s3202_s16  ;;  %s3205_s6 = int_to_ptr.hbm [resolvable:$true] %s3204_s6 }
 0xb0f   : > { %s4377_s25 = smov 128  }
 0xb10   : > { %4210 = dma.vmem_to_hbm [thread:$0]  (%p4213_p6), %s3203_s16, 256, %s3205_s6, [#allocation4], %s4377_s25, %s4377_s25, %s4372_s26  }
 0xb11   : > { %4357 = dma.done.wait (%p4213_p6), [#allocation4], 256  }
 0xb12   : > { %4359 = vsyncadd (%p4213_p6), [#allocation4], 4294967040 }
 0xb13 PF: > { %s22_s17 = sadd.s32 1, %s4362_s17  }
 0xb14   : > { %p19_p7 = scmp.ge.s32.totalorder %s22_s17, 6  }
 0xb16   :  { %21 = sbr.rel (!%p19_p7) target bundleno = 4 (0x4), region = 114 }
 0xb1b   :  { %3221 = vsyncpa [#allocation4], 1 }
 0xb1c   :  { %3223 = vsyncpa [#allocation4 + $0x1], 1 }

</bundles_post_ra>
